<compile_context>
chip_gen: v7x
topology: tpu7x:2x2x1
jax: 0.10.0
libtpu: 0.0.40
codegen_flags: <defaults>
</compile_context>

<pallas_src>
import functools

import jax
import jax.numpy as jnp
from jax import lax
from jax.experimental import pallas as pl
from jax.experimental.pallas import tpu as pltpu

_LANE = 128          # lane-padded embedding width kept across aggregator layers
_MIB = 1024 * 1024


# ----------------------------------------------------------------------------- helpers
def _pick_tile(n, cap, mults=(128, 8), min_grid=1):
    """Largest t <= cap with n % t == 0, t a multiple of one of `mults`, and
    n // t >= min_grid.  Falls back to n (single tile)."""
    for mult in mults:
        t = (min(cap, n) // mult) * mult
        while t >= mult:
            if n % t == 0 and n // t >= min_grid:
                return t
            t -= mult
    return n


def _log_sigmoid(x):
    # numerically stable log(sigmoid(x)); keep log(1+e) form (known-good lowering)
    return jnp.minimum(x, 0.0) - jnp.log(1.0 + jnp.exp(-jnp.abs(x)))


def _quantize_rows_int8(a):
    """Per-row symmetric int8 quantization (rows are softmax weights in [0, 1])."""
    row_max = jnp.max(jnp.abs(a), axis=1, keepdims=True)
    scale = jnp.maximum(row_max, 1e-30) * (1.0 / 127.0)
    q = jnp.clip(jnp.round(a / scale), -127.0, 127.0).astype(jnp.int8)
    return q, scale.astype(jnp.float32)


def _pad_lanes(x, mult=_LANE):
    """Zero-pad the trailing feature dim to a multiple of `mult` (exact for sums,
    dots and L2 norms)."""
    pad = (-x.shape[-1]) % mult
    if pad:
        x = jnp.pad(x, ((0, 0), (0, pad)))
    return x


# ----------------------------------------------------------------------------- kernels
def _bi_interaction_kernel(adj_ref, scale_ref, ego_rhs_ref, ego_row_ref,
                           w1_ref, w2_ref, b1_ref, b2_ref, o_ref, acc_ref):
    """One KGAT Bi-Interaction aggregator layer, tiled over (row tile i, col tile k).

    acc (f32 VMEM) accumulates A_q @ E over k.  On the last k step the per-row
    dequant scale is applied and the two Linear layers run as two K=128 MXU dots,
    followed by LeakyReLU, sum and L2 row-normalization.  Lane-padded columns stay
    exactly zero so semantics match the unpadded layers.
    """
    # TODO(synk): the Aggregator class body is not in the provided source; this is the
    #             canonical KGAT Bi-Interaction aggregator (eval mode: dropout = identity).
    k = pl.program_id(1)

    @pl.when(k == 0)
    def _init():
        acc_ref[...] = jnp.zeros_like(acc_ref)

    # A_q @ E : int8 (or bf16) adjacency converted to bf16 on the fly, bf16 ego RHS,
    # f32 MXU accumulation.  Per-row dequant scale is applied at finalize.
    a = adj_ref[...].astype(jnp.float32).astype(jnp.bfloat16)
    acc_ref[...] += jnp.dot(a, ego_rhs_ref[...], preferred_element_type=jnp.float32)

    @pl.when(k == pl.num_programs(1) - 1)
    def _finalize():
        side = acc_ref[...] * scale_ref[...]            # per-row dequantization
        e = ego_row_ref[...]
        # Bi-Interaction: LeakyReLU(W1(e+side)+b1) + LeakyReLU(W2(e*side)+b2)
        h1 = jnp.dot(e + side, w1_ref[...], preferred_element_type=jnp.float32)
        h1 = h1 + b1_ref[...]
        h2 = jnp.dot(e * side, w2_ref[...], preferred_element_type=jnp.float32)
        h2 = h2 + b2_ref[...]
        h1 = jnp.where(h1 >= 0.0, h1, 0.01 * h1)        # LeakyReLU(0.01)
        h2 = jnp.where(h2 >= 0.0, h2, 0.01 * h2)
        out = h1 + h2                                    # padded lanes stay exactly 0
        ssq = jnp.sum(out * out, axis=1, keepdims=True)
        out = out * lax.rsqrt(jnp.maximum(ssq, 1e-24))   # F.normalize(p=2, dim=1)
        o_ref[...] = out.astype(o_ref.dtype)


def _score_kernel(u_ref, i_ref, o_ref):
    """score = U @ I^T via dot_general on the shared feature dim (no transpose)."""
    o_ref[...] = lax.dot_general(
        u_ref[...], i_ref[...],
        dimension_numbers=(((1,), (1,)), ((), ())),
        preferred_element_type=jnp.float32).astype(o_ref.dtype)


def _cf_loss_kernel(u_ref, p_ref, n_ref, o_ref, acc_ref, *, reg, batch):
    """Batch-tiled BPR loss + L2 mean regularization (matches _calc_cf_loss)."""
    b = pl.program_id(0)

    @pl.when(b == 0)
    def _init():
        acc_ref[...] = jnp.zeros_like(acc_ref)

    u = u_ref[...]
    p = p_ref[...]
    n = n_ref[...]
    pos = jnp.sum(u * p, axis=1, keepdims=True)
    neg = jnp.sum(u * n, axis=1, keepdims=True)
    bpr = -jnp.sum(_log_sigmoid(pos - neg))
    l2 = 0.5 * (jnp.sum(u * u) + jnp.sum(p * p) + jnp.sum(n * n))
    acc_ref[...] += jnp.broadcast_to(bpr + reg * l2, (1, 1))

    @pl.when(b == pl.num_programs(0) - 1)
    def _finalize():
        o_ref[...] = (acc_ref[...] * (1.0 / batch)).astype(o_ref.dtype)


def _kg_loss_kernel(hpn_ref, r_ref, w_ref, o_ref, acc_ref, *, reg, batch):
    """Batch-tiled TransR transform: (head, pos, neg) stacked on a q=3 axis so one
    batched MXU einsum reuses each sample's trans matrix for all three projections."""
    b = pl.program_id(0)

    @pl.when(b == 0)
    def _init():
        acc_ref[...] = jnp.zeros_like(acc_ref)

    hpn = hpn_ref[...]          # (TB, 3, D) bf16
    w = w_ref[...]              # (TB, D, K) bf16
    r = r_ref[...]              # (TB, K)    f32

    t = jnp.einsum('bqd,bdk->bqk', hpn, w, preferred_element_type=jnp.float32)
    th = t[:, 0, :]
    tp = t[:, 1, :]
    tn = t[:, 2, :]

    pos = jnp.sum((th + r - tp) ** 2, axis=1)   # (TB,)
    neg = jnp.sum((th + r - tn) ** 2, axis=1)   # (TB,)
    kg = -jnp.sum(_log_sigmoid(neg - pos))
    l2 = 0.5 * (jnp.sum(th * th) + jnp.sum(r * r) + jnp.sum(tp * tp) + jnp.sum(tn * tn))
    acc_ref[...] += jnp.broadcast_to(kg + reg * l2, (1, 1))

    @pl.when(b == pl.num_programs(0) - 1)
    def _finalize():
        o_ref[...] = (acc_ref[...] * (1.0 / batch)).astype(o_ref.dtype)


# ----------------------------------------------------------------------------- wrappers
def _agg_vmem_bytes(tm, tk, adj_itemsize):
    d = _LANE
    dbl = 2                                # double-buffered pipeline
    adj = tm * tk * adj_itemsize * dbl
    scale = tm * _LANE * 4 * dbl           # (tm, 1) block, lane-padded (conservative)
    rhs = tk * d * 2 * dbl
    row = tm * d * 4 * dbl
    w = 2 * d * d * 4 * dbl
    bias = 2 * 8 * d * 4 * dbl             # sublane-padded (conservative)
    out = tm * d * 4 * dbl
    acc = tm * d * 4
    return adj + scale + rhs + row + w + bias + out + acc


def bi_interaction_aggregate(adj_q, adj_scale, ego_pad, w1, w2, b1, b2, *,
                             tm=None, tk=None):
    n = ego_pad.shape[0]
    d = _LANE
    adj_itemsize = jnp.dtype(adj_q.dtype).itemsize
    # tm: >=2 row tiles when possible (v7x megacore split); multiple of 32 for int8.
    tm = tm if tm is not None else _pick_tile(n, 1024, (128, 32), min_grid=2)
    tk = tk if tk is not None else _pick_tile(n, 2048, (128,), min_grid=1)
    if n % tm:
        tm = n
    if n % tk:
        tk = n
    grid = (n // tm, n // tk)
    ego_rhs = ego_pad.astype(jnp.bfloat16)

    vmem_limit = int(min(max(2 * _agg_vmem_bytes(tm, tk, adj_itemsize), 8 * _MIB),
                         32 * _MIB))

    cost = pl.CostEstimate(
        flops=2 * n * n * d + 4 * n * d * d + 10 * n * d,
        transcendentals=n,
        bytes_accessed=n * n * adj_itemsize + n * d * (2 + 4 + 4)
                       + 2 * d * d * 4 + n * 4)

    return pl.pallas_call(
        _bi_interaction_kernel,
        out_shape=jax.ShapeDtypeStruct((n, d), jnp.float32),
        grid=grid,
        in_specs=[
            pl.BlockSpec((tm, tk), lambda i, k: (i, k)),     # quantized adjacency
            pl.BlockSpec((tm, 1), lambda i, k: (i, 0)),      # per-row dequant scale
            pl.BlockSpec((tk, d), lambda i, k: (k, 0)),      # ego RHS (bf16)
            pl.BlockSpec((tm, d), lambda i, k: (i, 0)),      # ego rows (f32)
            pl.BlockSpec((d, d), lambda i, k: (0, 0)),       # W1 (lane-padded)
            pl.BlockSpec((d, d), lambda i, k: (0, 0)),       # W2 (lane-padded)
            pl.BlockSpec((1, d), lambda i, k: (0, 0)),       # b1
            pl.BlockSpec((1, d), lambda i, k: (0, 0)),       # b2
        ],
        out_specs=pl.BlockSpec((tm, d), lambda i, k: (i, 0)),
        scratch_shapes=[pltpu.VMEM((tm, d), jnp.float32)],
        compiler_params=pltpu.CompilerParams(
            dimension_semantics=("parallel", "arbitrary"),
            vmem_limit_bytes=vmem_limit),
        cost_estimate=cost,
    )(adj_q, adj_scale, ego_rhs, ego_pad, w1, w2, b1, b2)


def predict_scores(user_emb, item_emb, *, ti=None):
    b, d = user_emb.shape
    m = item_emb.shape[0]
    ti = ti if ti is not None else _pick_tile(m, 2048, (128,), min_grid=1)
    if m % ti:
        ti = m
    grid = (m // ti,)
    cost = pl.CostEstimate(flops=2 * b * m * d, transcendentals=0,
                           bytes_accessed=(b * d + m * d) * 2 + b * m * 4)
    return pl.pallas_call(
        _score_kernel,
        out_shape=jax.ShapeDtypeStruct((b, m), jnp.float32),
        grid=grid,
        in_specs=[
            pl.BlockSpec((b, d), lambda j: (0, 0)),
            pl.BlockSpec((ti, d), lambda j: (j, 0)),
        ],
        out_specs=pl.BlockSpec((b, ti), lambda j: (0, j)),
        compiler_params=pltpu.CompilerParams(dimension_semantics=("parallel",)),
        cost_estimate=cost,
    )(user_emb, item_emb)


def cf_loss(user_emb, pos_emb, neg_emb, reg, *, tb=None):
    b, d = user_emb.shape
    if tb is None:
        # single grid step when the batch comfortably fits VMEM (it almost always does)
        tb = b if 3 * b * d * 4 <= 8 * _MIB else _pick_tile(b, 1024, (8,), min_grid=1)
    if b % tb:
        tb = b
    out = pl.pallas_call(
        functools.partial(_cf_loss_kernel, reg=reg, batch=float(b)),
        out_shape=jax.ShapeDtypeStruct((1, 1), jnp.float32),
        grid=(b // tb,),
        in_specs=[
            pl.BlockSpec((tb, d), lambda i: (i, 0)),
            pl.BlockSpec((tb, d), lambda i: (i, 0)),
            pl.BlockSpec((tb, d), lambda i: (i, 0)),
        ],
        out_specs=pl.BlockSpec((1, 1), lambda i: (0, 0)),
        scratch_shapes=[pltpu.VMEM((1, 1), jnp.float32)],
        compiler_params=pltpu.CompilerParams(dimension_semantics=("arbitrary",)),
    )(user_emb, pos_emb, neg_emb)
    return out[0, 0]


def kg_loss(head_emb, rel_emb, trans_w, pos_emb, neg_emb, reg, *, tb=None):
    b, d = head_emb.shape
    k = rel_emb.shape[1]
    if tb is None:
        per_sample = 3 * d * 2 + k * 4 + d * k * 2
        tb = b if b * per_sample <= 8 * _MIB else _pick_tile(b, 512, (8,), min_grid=1)
    if b % tb:
        tb = b
    # stack head/pos/neg on a q=3 axis so each sample's W is reused for all three
    hpn = jnp.stack([head_emb, pos_emb, neg_emb], axis=1).astype(jnp.bfloat16)
    w_bf16 = trans_w.astype(jnp.bfloat16)
    out = pl.pallas_call(
        functools.partial(_kg_loss_kernel, reg=reg, batch=float(b)),
        out_shape=jax.ShapeDtypeStruct((1, 1), jnp.float32),
        grid=(b // tb,),
        in_specs=[
            pl.BlockSpec((tb, 3, d), lambda i: (i, 0, 0)),
            pl.BlockSpec((tb, k), lambda i: (i, 0)),
            pl.BlockSpec((tb, d, k), lambda i: (i, 0, 0)),
        ],
        out_specs=pl.BlockSpec((1, 1), lambda i: (0, 0)),
        scratch_shapes=[pltpu.VMEM((1, 1), jnp.float32)],
        compiler_params=pltpu.CompilerParams(dimension_semantics=("arbitrary",)),
    )(hpn, rel_emb, w_bf16)
    return out[0, 0]


# ----------------------------------------------------------------------------- KGAT model (JAX)
class KGATPallas:
    def __init__(self, key, user_num, entity_num, relation_num,
                 cf_dim=64, kg_dim=64, layer_size=(64, 32, 16),
                 reg=(1e-5, 1e-5), adj_precision="int8",
                 agg_tile_m=None, agg_tile_k=None, loss_tile_b=None):
        assert cf_dim <= _LANE and all(s <= _LANE for s in layer_size)
        self.user_num = user_num
        self.entity_num = entity_num
        self.relation_num = relation_num
        self.cf_dim = cf_dim
        self.kg_dim = kg_dim
        self.layer_size = list(layer_size)
        self.reg = reg
        self.agg_tile_m = agg_tile_m
        self.agg_tile_k = agg_tile_k
        self.loss_tile_b = loss_tile_b
        n = user_num + entity_num

        def xavier(k, shape, fan_in, fan_out):
            bound = (6.0 / (fan_in + fan_out)) ** 0.5
            return jax.random.uniform(k, shape, jnp.float32, -bound, bound)

        keys = jax.random.split(key, 4 + 2 * len(self.layer_size))
        self.user_entity_embedding = xavier(keys[0], (n, cf_dim), cf_dim, n)
        self.relation_embedding = xavier(keys[1], (relation_num, kg_dim), kg_dim,
                                         relation_num)
        self.trans_matrix = xavier(keys[2], (relation_num, cf_dim, kg_dim),
                                   cf_dim * kg_dim, relation_num * kg_dim)
        self._ego0_pad = _pad_lanes(self.user_entity_embedding)   # (n, 128), zeros pad

        # TODO(synk): dense row-softmax stand-in for the sparse attentive_matrix
        #             (torch.sparse.softmax normalizes only over existing edges).
        logits = jax.random.normal(keys[3], (n, n), jnp.float32)
        attentive = jax.nn.softmax(logits, axis=1)
        self.attentive_matrix = attentive
        if adj_precision == "int8":
            # halves adjacency HBM bytes on the memory-bound A@E stream (v5e/v6e)
            self._adj_q, self._adj_scale = _quantize_rows_int8(attentive)
        else:
            self._adj_q = attentive.astype(jnp.bfloat16)
            self._adj_scale = jnp.ones((n, 1), jnp.float32)
        # TODO(synk): on v7x use an fp8-e4m3 adjacency cast (no integer MXU path there).

        # Bi-Interaction aggregator params: two Linear(in, out) per layer, stored
        # lane-padded to (128, 128) weights and (1, 128) biases (padding is exact zeros).
        self.agg_params = []
        dims = [cf_dim] + self.layer_size
        kidx = 4
        for li in range(len(self.layer_size)):
            din, dout = dims[li], dims[li + 1]
            w1 = xavier(keys[kidx + 0], (din, dout), din, dout)
            w2 = xavier(keys[kidx + 1], (din, dout), din, dout)
            kidx += 2
            w1p = jnp.zeros((_LANE, _LANE), jnp.float32).at[:din, :dout].set(w1)
            w2p = jnp.zeros((_LANE, _LANE), jnp.float32).at[:din, :dout].set(w2)
            b1p = jnp.zeros((1, _LANE), jnp.float32)
            b2p = jnp.zeros((1, _LANE), jnp.float32)
            self.agg_params.append((w1p, w2p, b1p, b2p, dout))

    # ---- _build_cf_embeddings: Pallas aggregator per layer, lane-padded carry
    def build_cf_embeddings(self):
        ego_pad = self._ego0_pad
        all_embeddings = [self.user_entity_embedding]
        for (w1, w2, b1, b2, dout) in self.agg_params:
            ego_pad = bi_interaction_aggregate(
                self._adj_q, self._adj_scale, ego_pad, w1, w2, b1, b2,
                tm=self.agg_tile_m, tk=self.agg_tile_k)
            all_embeddings.append(ego_pad[:, :dout])   # sliced only for the final concat
        return jnp.concatenate(all_embeddings, axis=1)

    # ---- mode = PREDICT
    def calc_score(self, user_ids, item_ids):
        all_emb = self.build_cf_embeddings()
        u = _pad_lanes(all_emb[user_ids]).astype(jnp.bfloat16)
        it = _pad_lanes(all_emb[item_ids]).astype(jnp.bfloat16)
        return predict_scores(u, it)

    # ---- mode = TRAIN_CF
    def calc_cf_loss(self, user_ids, pos_item_ids, neg_item_ids):
        all_emb = self.build_cf_embeddings()
        u = _pad_lanes(all_emb[user_ids])
        p = _pad_lanes(all_emb[pos_item_ids])
        n = _pad_lanes(all_emb[neg_item_ids])
        return cf_loss(u, p, n, self.reg[0], tb=self.loss_tile_b)

    # ---- mode = TRAIN_KG
    def calc_kg_loss(self, heads, relations, pos_tails, neg_tails):
        rel_emb = self.relation_embedding[relations]
        trans_w = self.trans_matrix[relations]
        return kg_loss(self.user_entity_embedding[heads], rel_emb, trans_w,
                       self.user_entity_embedding[pos_tails],
                       self.user_entity_embedding[neg_tails],
                       self.reg[1], tb=self.loss_tile_b)

    # TODO(synk): mode = UPDATE_ATTENTION needs torch.sparse_coo_tensor,
    #             torch.sparse.softmax, bincount-based scatter and the undisclosed
    #             MultiHeadAttention module -- no clean Pallas equivalent here.


# ----------------------------------------------------------------------------- main
if __name__ == "__main__":
    key = jax.random.PRNGKey(0)

    USER_NUM, ENTITY_NUM, RELATION_NUM = 64, 192, 4
    N = USER_NUM + ENTITY_NUM                              # 256 nodes
    model = KGATPallas(key, USER_NUM, ENTITY_NUM, RELATION_NUM,
                       cf_dim=64, kg_dim=64, layer_size=(64, 32, 16),
                       adj_precision="int8",
                       agg_tile_m=128, agg_tile_k=128,     # 2x2 grid per layer
                       loss_tile_b=None)                   # single-step loss grids

    # PREDICT: 8 users x 256 items -> item-tiled score kernel
    user_ids = jnp.arange(8, dtype=jnp.int32)
    item_ids = jnp.arange(N, dtype=jnp.int32)
    scores = model.calc_score(user_ids, item_ids)
    jax.block_until_ready(scores)
    assert scores.shape == (8, N)

    # TRAIN_CF (batch 16)
    cf_users = jnp.arange(16, dtype=jnp.int32) % USER_NUM
    pos_ids = jnp.arange(USER_NUM, USER_NUM + 16, dtype=jnp.int32)
    neg_ids = jnp.arange(USER_NUM + 16, USER_NUM + 32, dtype=jnp.int32)
    loss_cf = model.calc_cf_loss(cf_users, pos_ids, neg_ids)
    jax.block_until_ready(loss_cf)

    # TRAIN_KG (batch 16)
    heads = jnp.arange(USER_NUM, USER_NUM + 16, dtype=jnp.int32)
    relations = jnp.arange(16, dtype=jnp.int32) % RELATION_NUM
    pos_tails = jnp.arange(USER_NUM + 32, USER_NUM + 48, dtype=jnp.int32)
    neg_tails = jnp.arange(USER_NUM + 48, USER_NUM + 64, dtype=jnp.int32)
    loss_kg = model.calc_kg_loss(heads, relations, pos_tails, neg_tails)
    jax.block_until_ready(loss_kg)

    assert jnp.isfinite(scores).all()
    assert jnp.isfinite(loss_cf) and jnp.isfinite(loss_kg)
    print("KERNEL_OK")
</pallas_src>

<mosaic_0001>
module attributes {stable_mosaic.version = 11 : i64} {
  func.func @_bi_interaction_kernel(%arg0: i32, %arg1: i32, %arg2: memref<128x128xi8, #tpu.memory_space<vmem>>, %arg3: memref<128x1xf32, #tpu.memory_space<vmem>>, %arg4: memref<128x128xbf16, #tpu.memory_space<vmem>>, %arg5: memref<128x128xf32, #tpu.memory_space<vmem>>, %arg6: memref<128x128xf32, #tpu.memory_space<vmem>>, %arg7: memref<128x128xf32, #tpu.memory_space<vmem>>, %arg8: memref<1x128xf32, #tpu.memory_space<vmem>>, %arg9: memref<1x128xf32, #tpu.memory_space<vmem>>, %arg10: memref<128x128xf32, #tpu.memory_space<vmem>>, %arg11: memref<128x128xf32, #tpu.memory_space<vmem>>) attributes {dimension_semantics = [#tpu.dimension_semantics<parallel>, #tpu.dimension_semantics<arbitrary>], iteration_bounds = array<i64: 2, 2>, scalar_prefetch = 0 : i64, scratch_operands = 1 : i64, tpu.core_type = #tpu.core_type<tc>, window_params = [{transform_indices = @transform_0, window_bounds = array<i64: 128, 128>}, {transform_indices = @transform_1, window_bounds = array<i64: 128, 1>}, {transform_indices = @transform_2, window_bounds = array<i64: 128, 128>}, {transform_indices = @transform_3, window_bounds = array<i64: 128, 128>}, {pipeline_mode = #tpu.pipeline_mode<synchronous>, transform_indices = @transform_4, window_bounds = array<i64: 128, 128>}, {pipeline_mode = #tpu.pipeline_mode<synchronous>, transform_indices = @transform_5, window_bounds = array<i64: 128, 128>}, {pipeline_mode = #tpu.pipeline_mode<synchronous>, transform_indices = @transform_6, window_bounds = array<i64: 1, 128>}, {pipeline_mode = #tpu.pipeline_mode<synchronous>, transform_indices = @transform_7, window_bounds = array<i64: 1, 128>}, {transform_indices = @transform_8, window_bounds = array<i64: 128, 128>}]} {
    %c0_i32 = arith.constant 0 : i32
    %0 = arith.cmpi eq, %arg1, %c0_i32 : i32
    %1 = arith.extui %0 : i1 to i32
    %c0_i32_0 = arith.constant 0 : i32
    %2 = arith.cmpi ne, %1, %c0_i32_0 : i32
    scf.if %2 {
      %cst_9 = arith.constant 0.000000e+00 : f32
      %14 = vector.broadcast %cst_9 : f32 to vector<128x128xf32>
      %c0_10 = arith.constant 0 : index
      %c0_11 = arith.constant 0 : index
      %15 = vector.load %arg11[%c0_10, %c0_11] : memref<128x128xf32, #tpu.memory_space<vmem>>, vector<128x128xf32>
      tpu.vector_store %arg11[%c0_10, %c0_11], %14 {strides = array<i32>} : memref<128x128xf32, #tpu.memory_space<vmem>>, vector<128x128xf32>,
    } else {
    }
    %c0 = arith.constant 0 : index
    %c0_1 = arith.constant 0 : index
    %3 = vector.load %arg2[%c0, %c0_1] : memref<128x128xi8, #tpu.memory_space<vmem>>, vector<128x128xi8>
    %4 = arith.sitofp %3 : vector<128x128xi8> to vector<128x128xf32>
    %5 = arith.truncf %4 : vector<128x128xf32> to vector<128x128xbf16>
    %c0_2 = arith.constant 0 : index
    %c0_3 = arith.constant 0 : index
    %6 = vector.load %arg11[%c0_2, %c0_3] : memref<128x128xf32, #tpu.memory_space<vmem>>, vector<128x128xf32>
    %c0_4 = arith.constant 0 : index
    %c0_5 = arith.constant 0 : index
    %7 = vector.load %arg4[%c0_4, %c0_5] : memref<128x128xbf16, #tpu.memory_space<vmem>>, vector<128x128xbf16>
    %cst = arith.constant dense<0.000000e+00> : vector<128x128xf32>
    %8 = tpu.matmul %5, %7, %cst {dimension_numbers = #tpu.dot_dimension_numbers<[1], [0], [0], [1], [0, 0, 1, 1], [], []>} : vector<128x128xbf16>, vector<128x128xbf16>, vector<128x128xf32> -> vector<128x128xf32>
    %9 = arith.addf %6, %8 : vector<128x128xf32>
    %c0_6 = arith.constant 0 : index
    %c0_7 = arith.constant 0 : index
    %10 = vector.load %arg11[%c0_6, %c0_7] : memref<128x128xf32, #tpu.memory_space<vmem>>, vector<128x128xf32>
    tpu.vector_store %arg11[%c0_6, %c0_7], %9 {strides = array<i32>} : memref<128x128xf32, #tpu.memory_space<vmem>>, vector<128x128xf32>,
    %c1_i32 = arith.constant 1 : i32
    %11 = arith.cmpi eq, %arg1, %c1_i32 : i32
    %12 = arith.extui %11 : i1 to i32
    %c0_i32_8 = arith.constant 0 : i32
    %13 = arith.cmpi ne, %12, %c0_i32_8 : i32
    scf.if %13 {
      %c0_9 = arith.constant 0 : index
      %c0_10 = arith.constant 0 : index
      %14 = vector.load %arg11[%c0_9, %c0_10] : memref<128x128xf32, #tpu.memory_space<vmem>>, vector<128x128xf32>
      %c0_11 = arith.constant 0 : index
      %c0_12 = arith.constant 0 : index
      %15 = vector.load %arg3[%c0_11, %c0_12] : memref<128x1xf32, #tpu.memory_space<vmem>>, vector<128x1xf32>
      %16 = vector.broadcast %15 : vector<128x1xf32> to vector<128x128xf32>
      %17 = arith.mulf %14, %16 : vector<128x128xf32>
      %c0_13 = arith.constant 0 : index
      %c0_14 = arith.constant 0 : index
      %18 = vector.load %arg5[%c0_13, %c0_14] : memref<128x128xf32, #tpu.memory_space<vmem>>, vector<128x128xf32>
      %19 = arith.addf %18, %17 : vector<128x128xf32>
      %c0_15 = arith.constant 0 : index
      %c0_16 = arith.constant 0 : index
      %20 = vector.load %arg6[%c0_15, %c0_16] : memref<128x128xf32, #tpu.memory_space<vmem>>, vector<128x128xf32>
      %cst_17 = arith.constant dense<0.000000e+00> : vector<128x128xf32>
      %21 = tpu.matmul %19, %20, %cst_17 {dimension_numbers = #tpu.dot_dimension_numbers<[1], [0], [0], [1], [0, 0, 1, 1], [], []>} : vector<128x128xf32>, vector<128x128xf32>, vector<128x128xf32> -> vector<128x128xf32>
      %c0_18 = arith.constant 0 : index
      %c0_19 = arith.constant 0 : index
      %22 = vector.load %arg8[%c0_18, %c0_19] : memref<1x128xf32, #tpu.memory_space<vmem>>, vector<1x128xf32>
      %23 = vector.broadcast %22 : vector<1x128xf32> to vector<128x128xf32>
      %24 = arith.addf %21, %23 : vector<128x128xf32>
      %25 = arith.mulf %18, %17 : vector<128x128xf32>
      %c0_20 = arith.constant 0 : index
      %c0_21 = arith.constant 0 : index
      %26 = vector.load %arg7[%c0_20, %c0_21] : memref<128x128xf32, #tpu.memory_space<vmem>>, vector<128x128xf32>
      %cst_22 = arith.constant dense<0.000000e+00> : vector<128x128xf32>
      %27 = tpu.matmul %25, %26, %cst_22 {dimension_numbers = #tpu.dot_dimension_numbers<[1], [0], [0], [1], [0, 0, 1, 1], [], []>} : vector<128x128xf32>, vector<128x128xf32>, vector<128x128xf32> -> vector<128x128xf32>
      %c0_23 = arith.constant 0 : index
      %c0_24 = arith.constant 0 : index
      %28 = vector.load %arg9[%c0_23, %c0_24] : memref<1x128xf32, #tpu.memory_space<vmem>>, vector<1x128xf32>
      %29 = vector.broadcast %28 : vector<1x128xf32> to vector<128x128xf32>
      %30 = arith.addf %27, %29 : vector<128x128xf32>
      %cst_25 = arith.constant 0.000000e+00 : f32
      %31 = vector.broadcast %cst_25 : f32 to vector<128x128xf32>
      %32 = arith.cmpf oge, %24, %31 : vector<128x128xf32>
      %cst_26 = arith.constant 0.00999999977 : f32
      %33 = vector.broadcast %cst_26 : f32 to vector<128x128xf32>
      %34 = arith.mulf %33, %24 : vector<128x128xf32>
      %35 = arith.select %32, %24, %34 : vector<128x128xi1>, vector<128x128xf32>
      %cst_27 = arith.constant 0.000000e+00 : f32
      %36 = vector.broadcast %cst_27 : f32 to vector<128x128xf32>
      %37 = arith.cmpf oge, %30, %36 : vector<128x128xf32>
      %cst_28 = arith.constant 0.00999999977 : f32
      %38 = vector.broadcast %cst_28 : f32 to vector<128x128xf32>
      %39 = arith.mulf %38, %30 : vector<128x128xf32>
      %40 = arith.select %37, %30, %39 : vector<128x128xi1>, vector<128x128xf32>
      %41 = arith.addf %35, %40 : vector<128x128xf32>
      %42 = arith.mulf %41, %41 : vector<128x128xf32>
      %cst_29 = arith.constant dense<0.000000e+00> : vector<128xf32>
      %43 = vector.multi_reduction <add>, %42, %cst_29 [1] : vector<128x128xf32> to vector<128xf32>
      %44 = vector.shape_cast %43 : vector<128xf32> to vector<128x1xf32>
      %cst_30 = arith.constant 1.000000e-24 : f32
      %45 = vector.broadcast %cst_30 : f32 to vector<128x1xf32>
      %46 = arith.maximumf %44, %45 : vector<128x1xf32>
      %47 = math.rsqrt %46 : vector<128x1xf32>
      %48 = vector.broadcast %47 : vector<128x1xf32> to vector<128x128xf32>
      %49 = arith.mulf %41, %48 : vector<128x128xf32>
      %c0_31 = arith.constant 0 : index
      %c0_32 = arith.constant 0 : index
      %50 = vector.load %arg10[%c0_31, %c0_32] : memref<128x128xf32, #tpu.memory_space<vmem>>, vector<128x128xf32>
      tpu.vector_store %arg10[%c0_31, %c0_32], %49 {strides = array<i32>} : memref<128x128xf32, #tpu.memory_space<vmem>>, vector<128x128xf32>,
    } else {
    }
    return
  }
  func.func @transform_0(%arg0: i32, %arg1: i32) -> (i32, i32) {
    %c0_i32 = arith.constant 0 : i32
    return %arg0, %arg1 : i32, i32
  }
  func.func @transform_1(%arg0: i32, %arg1: i32) -> (i32, i32) {
    %c0_i32 = arith.constant 0 : i32
    %c0_i32_0 = arith.constant 0 : i32
    return %arg0, %c0_i32 : i32, i32
  }
  func.func @transform_2(%arg0: i32, %arg1: i32) -> (i32, i32) {
    %c0_i32 = arith.constant 0 : i32
    %c0_i32_0 = arith.constant 0 : i32
    return %arg1, %c0_i32 : i32, i32
  }
  func.func @transform_3(%arg0: i32, %arg1: i32) -> (i32, i32) {
    %c0_i32 = arith.constant 0 : i32
    %c0_i32_0 = arith.constant 0 : i32
    return %arg0, %c0_i32 : i32, i32
  }
  func.func @transform_4(%arg0: i32, %arg1: i32) -> (i32, i32) {
    %c0_i32 = arith.constant 0 : i32
    %c0_i32_0 = arith.constant 0 : i32
    %c0_i32_1 = arith.constant 0 : i32
    return %c0_i32, %c0_i32_0 : i32, i32
  }
  func.func @transform_5(%arg0: i32, %arg1: i32) -> (i32, i32) {
    %c0_i32 = arith.constant 0 : i32
    %c0_i32_0 = arith.constant 0 : i32
    %c0_i32_1 = arith.constant 0 : i32
    return %c0_i32, %c0_i32_0 : i32, i32
  }
  func.func @transform_6(%arg0: i32, %arg1: i32) -> (i32, i32) {
    %c0_i32 = arith.constant 0 : i32
    %c0_i32_0 = arith.constant 0 : i32
    %c0_i32_1 = arith.constant 0 : i32
    return %c0_i32, %c0_i32_0 : i32, i32
  }
  func.func @transform_7(%arg0: i32, %arg1: i32) -> (i32, i32) {
    %c0_i32 = arith.constant 0 : i32
    %c0_i32_0 = arith.constant 0 : i32
    %c0_i32_1 = arith.constant 0 : i32
    return %c0_i32, %c0_i32_0 : i32, i32
  }
  func.func @transform_8(%arg0: i32, %arg1: i32) -> (i32, i32) {
    %c0_i32 = arith.constant 0 : i32
    %c0_i32_0 = arith.constant 0 : i32
    return %arg0, %c0_i32 : i32, i32
  }
}

</mosaic_0001>

<bundles_post_ra>
// kernel: tpu_custom_call.1
= control target key start
LH: loop header
LB: loop body
LE: loop exit
PB: predicated region body
PF: predicated region fallthrough
CT: control target
= control target key end

     0   :  { %s3185_s0 = inlined_call_operand.hbm [shape: s8[256,256], index: 0, kind: input, shape index: {}]   ;;  %s3186_s1 = inlined_call_operand.vmem [shape: f32[256,1], index: 1, kind: input, shape index: {}]   ;;  %s3187_s2 = inlined_call_operand.hbm [shape: bf16[256,128], index: 2, kind: input, shape index: {}]   ;;  %s3188_s3 = inlined_call_operand.vmem [shape: f32[256,128], index: 3, kind: input, shape index: {}]   ;;  %s3189_s4 = inlined_call_operand.hbm [shape: f32[128,128], index: 4, kind: input, shape index: {}]   ;;  %s3190_s5 = inlined_call_operand.hbm [shape: f32[128,128], index: 5, kind: input, shape index: {}]   ;;  %s3191_s6 = inlined_call_operand.vmem [shape: f32[1,128], index: 6, kind: input, shape index: {}]   ;;  %s3192_s7 = inlined_call_operand.vmem [shape: f32[1,128], index: 7, kind: input, shape index: {}]   ;;  %s3193_s8 = inlined_call_operand.hbm [shape: f32[256,128], index: 8, kind: output, shape index: {}]  }
   0x1   :  { %3215 = sst [smem:[#allocation26_spill]] %s3185_s0 }
   0x2   :  { %3216 = sst [smem:[#allocation27_spill]] %s3186_s1 }
   0x3   :  { %3217 = sst [smem:[#allocation28_spill]] %s3188_s3 }
   0x4   :  { %3218 = sst [smem:[#allocation29_spill]] %s3189_s4 }
   0x5   :  { %3219 = sst [smem:[#allocation30_spill]] %s3190_s5 }
   0x6   :  { %3220 = sst [smem:[#allocation31_spill]] %s3191_s6 }
   0x7   :  { %3221 = sst [smem:[#allocation32_spill]] %s3192_s7 }
   0x8   :  { %3222 = sst [smem:[#allocation33_spill]] %s3193_s8 }
   0x9   :  { %13 = vsyncpa [#allocation4], 0 }
   0xa   :  { %15 = vsyncpa [#allocation4 + $0x1], 0 }
   0xb   :  { %16 = vsyncpa [#allocation7], 0 }
   0xc   :  { %18 = vsyncpa [#allocation7 + $0x1], 0 }
   0xd   :  { %19 = vsyncpa [#allocation10], 0 }
   0xe   :  { %20 = vsyncpa [#allocation5], 0 }
   0xf   :  { %22 = vsyncpa [#allocation5 + $0x1], 0  ;;  %s2489_s27 = smov 0   ;;  %s2491_s28 = smov 0  }
  0x10   :  { %s2493_s29 = smov 0   ;;  %s2495_s30 = smov 0  }
  0x11   :  { %s2497_s9 = smov 0   ;;  %s2499_s10 = smov 0  }
  0x12   :  { %s2501_s11 = smov 0   ;;  %s2503_s12 = smov 0  }
  0x13   :  { %s2505_s13 = smov 0   ;;  %s2507_s14 = smov 0  }
  0x14   :  { %s2509_s15 = smov 0   ;;  %s2511_s16 = smov 0  }
  0x15   :  { %s2513_s17 = smov 0   ;;  %s2515_s18 = smov 0  }
  0x16 LB: > { %3223 = sst [smem:[#allocation17_spill]] %s2376_s27  ;;  %s2556_s19 = sadd.s32 4294967295, %s2428_s18   ;;  %s2428_s18 = sphi %s2515_s18, %s28_s18   ;;  %s2424_s17 = sphi %s2513_s17, %s3289_s17   ;;  %s2420_s16 = sphi %s2511_s16, %s3288_s16   ;;  %s2416_s15 = sphi %s2509_s15, %s3287_s15   ;;  %s2412_s14 = sphi %s2507_s14, %s3286_s14   ;;  %s2408_s13 = sphi %s2505_s13, %s3285_s13   ;;  %s2404_s12 = sphi %s2503_s12, %s3284_s12   ;;  %s2400_s11 = sphi %s2501_s11, %s3283_s11   ;;  %s2396_s10 = sphi %s2499_s10, %s3282_s10   ;;  %s2392_s9 = sphi %s2497_s9, %s3281_s9   ;;  %s2388_s30 = sphi %s2495_s30, %s3280_s30   ;;  %s2384_s29 = sphi %s2493_s29, %s3279_s29   ;;  %s2380_s28 = sphi %s2491_s28, %s3278_s28   ;;  %s2376_s27 = sphi %s2489_s27, %s3276_s27  }
  0x17   : > { %3224 = sst [smem:[#allocation18_spill]] %s2380_s28  ;;  %s1605_s20 = sadd.s32 4294967294, %s2428_s18  }
  0x18   : > { %3225 = sst [smem:[#allocation19_spill]] %s2412_s14  ;;  %p62_p0 = scmp.ne.s32.totalorder %s2404_s12, %s2400_s11 }
  0x19   : > { %3226 = sst [smem:[#allocation20_spill]] %s2416_s15  ;;  %p3199_p1 = scmp.eq.s32.totalorder %s2556_s19, 0 }
  0x1a   : > { %3227 = sst [smem:[#allocation21_spill]] %s2556_s19  ;;  %p114_p2 = scmp.ne.s32.totalorder %s2392_s9, %s2388_s30 }
  0x1b   : > { %p2565_p3 = por %p3199_p1, %p62_p0  ;;  %p247_p4 = scmp.ne.s32.totalorder %s2384_s29, %s2380_s28 }
  0x1c   : > { %p2573_p5 = por %p114_p2, %p3199_p1  ;;  %p248_p6 = scmp.eq.s32.totalorder %s2556_s19, 3 }
  0x1d   : > { %s3228_s22 = scalar_select %p2565_p3, 1, 0 }
  0x1e   : > { %s3229_s23 = scalar_select %p2573_p5, 1, 0 }
  0x1f   : > { %p253_p7 = scmp.ne.s32.totalorder %s2380_s28, %s2376_s27  ;;  %p254_p8 = scmp.eq.s32.totalorder %s1605_s20, 3 }
  0x20   : > { %3230 = sst [smem:[#allocation22_spill]] %s3229_s23  ;;  %p2580_p9 = por %p248_p6, %p247_p4 }
  0x21   : > { %p1606_p10 = scmp.ge.s32.totalorder %s2428_s18, 1  ;;  %p2585_p11 = por %p254_p8, %p253_p7 }
  0x22   : > { %s3231_s24 = scalar_select %p2580_p9, 1, 0 }
  0x23   : > { %s3233_s25 = scalar_select %p2585_p11, 1, 0 }
  0x24   : > { %3232 = sst [smem:[#allocation23_spill]] %s3231_s24  ;;  %p261_p12 = scmp.lt.s32.totalorder %s2428_s18, 5 }
  0x25   : > { %3234 = sst [smem:[#allocation24_spill]] %s3233_s25  ;;  %s2430_s30 = smov [#allocation8]  }
  0x26   : > { %p2590_p13 = pnand %p1606_p10, %p261_p12  ;;  %s273_s11 = sshll.u32 %s2430_s30, 4  ;;  %s274_s11 = int_to_ptr.vmem [resolvable:$true] %s273_s11 }
  0x27   : > { %s2431_s21 = smov [#allocation9]   ;;  %s3237_s4 = sld [smem:[#allocation29_spill]] }
  0x28   : > { %s3235_s26 = scalar_select %p2590_p13, 1, 0 }
  0x29   : > { %p1965_p0 = pneg %p2590_p13  ;;  %s286_s25 = sshll.u32 %s2431_s21, 4  ;;  %s2602_s25 = int_to_ptr.vmem [resolvable:$true] %s286_s25 }
  0x2b   : > { %p2598_p2 = pnand %p1965_p0, %p3199_p1 }
  0x2d   : > { %s2154_s24 = scalar_lea.hbm %s3237_s4, 2048  ;;  %p2156_p6 = pneg %p2598_p2 }
  0x2e   : > { %p2155_p4 = scmp.ne.s32.totalorder %s3237_s4, %s2154_s24  ;;  %p2161_p10 = scmp.lt.u32.totalorder %s2154_s24, %s3237_s4 }
  0x30   : > { %p2157_p7 = pnand %p2156_p6, %p2155_p4 }
  0x32   : > { %p2158_p8 = pneg %p2157_p7 }
  0x34   : > { %p2163_p12 = pnand %p2161_p10, %p2158_p8 }
  0x36   : > { %2166 = shalt.err (!%p2163_p12)
}
  0x37   : > { %s2167_s21 = scalar_lea.vmem %s274_s11, 2048  ;;  %p2175_p9 = scmp.lt.s32.totalorder %s274_s11, %s274_s11 }
  0x38   : > { %p2168_p0 = scmp.ne.s32.totalorder %s274_s11, %s2167_s21  ;;  %p2176_p5 = scmp.lt.s32.totalorder %s2167_s21, %s2167_s21 }
  0x3a   : > { %p2170_p1 = pnand %p2168_p0, %p2156_p6  ;;  %p2177_p3 = por %p2176_p5, %p2175_p9 }
  0x3c   : > { %p2171_p11 = pneg %p2170_p1 }
  0x3e   : > { %p2178_p13 = pnand %p2177_p3, %p2171_p11 }
  0x40   : > { %2181 = shalt.err (!%p2178_p13)
}
  0x41   : > { %s3204_s7 = smov 128   ;;  %s3205_s8 = smov 8  }
  0x42   : > { %1968 = dma.hbm_to_vmem [thread:$0]  (!%p2598_p2), %s3237_s4, 2048, %s274_s11, [#allocation7], %s3204_s7, %s3204_s7, %s3205_s8  }
  0x43   : > { %s3238_s5 = sld [smem:[#allocation30_spill]] }
  0x49   : > { %s2182_s30 = scalar_lea.hbm %s3238_s5, 2048 }
  0x4a   : > { %p2183_p1 = scmp.ne.s32.totalorder %s3238_s5, %s2182_s30  ;;  %p2189_p9 = scmp.lt.u32.totalorder %s2182_s30, %s3238_s5 }
  0x4c   : > { %p2185_p3 = pnand %p2183_p1, %p2156_p6 }
  0x4e   : > { %p2186_p5 = pneg %p2185_p3 }
  0x50   : > { %p2191_p11 = pnand %p2189_p9, %p2186_p5 }
  0x52   : > { %2194 = shalt.err (!%p2191_p11)
}
  0x53   : > { %s2195_s11 = scalar_lea.vmem %s2602_s25, 2048  ;;  %p2203_p8 = scmp.lt.s32.totalorder %s2602_s25, %s2602_s25 }
  0x54   : > { %p2196_p13 = scmp.ne.s32.totalorder %s2602_s25, %s2195_s11  ;;  %p2204_p10 = scmp.lt.s32.totalorder %s2195_s11, %s2195_s11 }
  0x56   : > { %p2198_p4 = pnand %p2196_p13, %p2156_p6  ;;  %p2205_p12 = por %p2204_p10, %p2203_p8 }
  0x58   : > { %p2199_p7 = pneg %p2198_p4 }
  0x5a   : > { %p2206_p0 = pnand %p2205_p12, %p2199_p7 }
  0x5c   : > { %2209 = shalt.err (!%p2206_p0)
}
  0x5d   : > { %1971 = dma.hbm_to_vmem [thread:$0]  (!%p2598_p2), %s3238_s5, 2048, %s2602_s25, [#allocation10], %s3204_s7, %s3204_s7, %s3205_s8  }
  0x5e   : > { %s37_s15 = sadd.s32 1, %s2420_s16  ;;  %s40_s20 = sadd.s32 1, %s2424_s17 }
  0x5f   : > { %p38_p6 = scmp.ge.s32.totalorder %s37_s15, 2  ;;  %s49_s6 = sadd.s32 1, %s2408_s13 }
  0x60   : > { %p56_p1 = scmp.ne.s32.totalorder %s2408_s13, %s2404_s12  ;;  %p3214_p3 = scmp.eq.s32.totalorder %s2428_s18, 0 }
  0x61   : > { %s3291_s15 = smov (%p38_p6, %s37_s15), 0  ;;  %s3293_s20 = smov (!%p38_p6, %s40_s20), %s2424_s17 }
  0x62   : > { %3239 = sst [smem:[#allocation25_spill]] %s3291_s15  ;;  %s2668_s27 = ssub.s32 %s2420_s16, %s3291_s15 }
  0x63   : > { %p2672_p2 = por %p3214_p3, %p56_p1  ;;  %p42_p5 = scmp.ge.s32.totalorder %s3293_s20, 2 }
  0x64   : > { %p99_p9 = scmp.eq.s32.totalorder %s2668_s27, 0  ;;  %p3213_p11 = scmp.lt.s32.totalorder %s2428_s18, 4 }
  0x65   : > { %s306_s14 = sand.u32 1, %s2408_s13   ;;  %s3295_s20 = smov (%p42_p5, %s3293_s20), 0 }
  0x66   : > { %s1610_s24 = sshll.u32 %s306_s14, 5  ;;  %s44_s30 = ssub.s32 %s2424_s17, %s3295_s20 }
  0x67   : > { %s46_s21 = sor.u32 %s2668_s27, %s44_s30  ;;  %p235_p13 = scmp.eq.s32.totalorder %s44_s30, 0 }
  0x68   : > { %p47_p4 = scmp.eq.s32.totalorder %s46_s21, 0  ;;  %s1644_s11 = sshll.u32 %s2424_s17, 3 }
  0x69   : > { %s3241_s1 = sadd.s32 1, %s2384_s29  ;;  %s316_s8 = sadd.s32 %s2420_s16, %s1644_s11 }
  0x6a   : > { %s2688_s3 = scalar_select %p235_p13, %s2384_s29, %s3241_s1  }
  0x6b   : > { %s2691_s7 = scalar_select %p47_p4, %s2408_s13, %s49_s6  }
  0x6c   : > { %s310_s4 = scalar_lea.vmem [#allocation3], %s1610_s24  ;;  %s1613_s15 = sshll.u32 %s316_s8, 7 }
  0x6d   : > { %s319_s5 = sshll.u32 %s310_s4, 4  ;;  %s3242_s0 = sld [smem:[#allocation26_spill]]  ;;  %s2694_s5 = int_to_ptr.vmem [resolvable:$true] %s319_s5 }
  0x6e   : > { %p2705_p7 = pnand %p3213_p11, %p2672_p2  ;;  %s2709_s4 = scalar_lea.sflag [#allocation4], %s306_s14 }
  0x70   : > { %p2212_p10 = pneg %p2705_p7 }
  0x73   : > { %s2699_s19 = scalar_lea.hbm %s3242_s0, %s1613_s15  ;;  %s2215_s15 = scalar_lea.hbm %s3242_s0, 2048 }
  0x74   : > { %s2210_s8 = scalar_lea.hbm %s2699_s19, 512  ;;  %p2216_p6 = scmp.lt.u32.totalorder %s2699_s19, %s3242_s0 }
  0x75   : > { %p2211_p8 = scmp.ne.s32.totalorder %s2699_s19, %s2210_s8  ;;  %p2217_p1 = scmp.lt.u32.totalorder %s2215_s15, %s2210_s8 }
  0x76   : > { %p2219_p5 = scmp.lt.u32.totalorder %s2210_s8, %s2699_s19 }
  0x77   : > { %p2213_p12 = pnand %p2212_p10, %p2211_p8  ;;  %p2218_p2 = por %p2217_p1, %p2216_p6 }
  0x79   : > { %p2214_p0 = pneg %p2213_p12  ;;  %p2220_p13 = por %p2219_p5, %p2218_p2 }
  0x7b   : > { %p2221_p4 = pnand %p2220_p13, %p2214_p0 }
  0x7d   : > { %2224 = shalt.err (!%p2221_p4)
}
  0x7e   : > { %s2225_s14 = scalar_lea.vmem %s2694_s5, 512  ;;  %s2434_s30 = smov [#allocation3]  }
  0x7f   : > { %p2226_p8 = scmp.ne.s32.totalorder %s2694_s5, %s2225_s14  ;;  %s2230_s21 = sshll.u32 %s2434_s30, 4  ;;  %s2231_s21 = int_to_ptr.vmem [resolvable:$false] %s2230_s21 }
  0x80   : > { %s2232_s11 = scalar_lea.vmem %s2231_s21, 1024  ;;  %p2233_p3 = scmp.lt.s32.totalorder %s2694_s5, %s2231_s21 }
  0x81   : > { %p2228_p12 = pnand %p2226_p8, %p2212_p10  ;;  %p2234_p6 = scmp.lt.s32.totalorder %s2232_s11, %s2225_s14 }
  0x83   : > { %p2229_p11 = pneg %p2228_p12  ;;  %p2235_p1 = por %p2234_p6, %p2233_p3 }
  0x85   : > { %p2236_p2 = pnand %p2235_p1, %p2229_p11 }
  0x87   : > { %2239 = shalt.err (!%p2236_p2)
}
  0x88   : > { %s2435_s1 = smov 256   ;;  %s3244_s8 = smov 8  }
  0x89   : > { %s3245_s28 = smov 128   ;;  %s101_s23 = sadd.s32 1, %s2396_s10 }
  0x8a   : > { %1975 = dma.hbm_to_vmem [thread:$0]  (!%p2705_p7), %s2699_s19, 512, %s2694_s5, %s2709_s4, %s2435_s1, %s3245_s28, %s3244_s8  }
  0x8b   : > { %p108_p3 = scmp.ne.s32.totalorder %s2396_s10, %s2392_s9  ;;  %p3246_p11 = scmp.eq.s32.totalorder %s2428_s18, 0 }
  0x8c   : > { %s2745_s6 = scalar_select %p99_p9, %s2396_s10, %s101_s23  }
  0x8d   : > { %p110_p10 = por %p108_p3, %p3246_p11  ;;  %s338_s15 = sand.u32 1, %s2428_s18  }
  0x8e   : > { %s340_s25 = sand.u32 1, %s2396_s10   ;;  %s1645_s14 = sshll.u32 %s2420_s16, 10 }
  0x8f   : > { %s1614_s24 = sshll.u32 %s340_s25, 6  ;;  %s2755_s11 = scalar_lea.hbm %s3187_s2, %s1645_s14 }
  0x90   : > { %s342_s5 = scalar_lea.vmem [#allocation6], %s1614_s24  ;;  %p3247_p7 = scmp.lt.s32.totalorder %s2428_s18, 4 }
  0x91   : > { %s349_s19 = sshll.u32 %s342_s5, 4  ;;  %s2765_s4 = scalar_lea.sflag [#allocation7], %s338_s15  ;;  %s2763_s19 = int_to_ptr.vmem [resolvable:$true] %s349_s19 }
  0x92   : > { %p2759_p9 = pnand %p3247_p7, %p110_p10  ;;  %s2240_s1 = scalar_lea.hbm %s2755_s11, 1024 }
  0x93   : > { %p2241_p0 = scmp.ne.s32.totalorder %s2755_s11, %s2240_s1  ;;  %s2245_s23 = scalar_lea.hbm %s3187_s2, 2048 }
  0x94   : > { %p2242_p5 = pneg %p2759_p9  ;;  %p2246_p8 = scmp.lt.u32.totalorder %s2755_s11, %s3187_s2 }
  0x95   : > { %p2247_p12 = scmp.lt.u32.totalorder %s2245_s23, %s2240_s1  ;;  %p2249_p1 = scmp.lt.u32.totalorder %s2240_s1, %s2755_s11 }
  0x96   : > { %p2243_p13 = pnand %p2242_p5, %p2241_p0 }
  0x97   : > { %p2248_p6 = por %p2247_p12, %p2246_p8 }
  0x98   : > { %p2244_p4 = pneg %p2243_p13 }
  0x99   : > { %p2250_p2 = por %p2249_p1, %p2248_p6 }
  0x9b   : > { %p2251_p3 = pnand %p2250_p2, %p2244_p4 }
  0x9d   : > { %2254 = shalt.err (!%p2251_p3)
}
  0x9e   : > { %s2255_s15 = scalar_lea.vmem %s2763_s19, 1024  ;;  %s2436_s14 = smov [#allocation6]  }
  0x9f   : > { %p2256_p11 = scmp.ne.s32.totalorder %s2763_s19, %s2255_s15  ;;  %s2260_s30 = sshll.u32 %s2436_s14, 4  ;;  %s2261_s30 = int_to_ptr.vmem [resolvable:$false] %s2260_s30 }
  0xa0   : > { %s2262_s21 = scalar_lea.vmem %s2261_s30, 2048  ;;  %p2263_p0 = scmp.lt.s32.totalorder %s2763_s19, %s2261_s30 }
  0xa1   : > { %p2258_p10 = pnand %p2256_p11, %p2242_p5  ;;  %p2264_p13 = scmp.lt.s32.totalorder %s2262_s21, %s2255_s15 }
  0xa3   : > { %p2259_p7 = pneg %p2258_p10  ;;  %p2265_p8 = por %p2264_p13, %p2263_p0 }
  0xa5   : > { %p2266_p12 = pnand %p2265_p8, %p2259_p7 }
  0xa7   : > { %2269 = shalt.err (!%p2266_p12)
}
  0xa8   : > { %s2437_s5 = smov 64   ;;  %s2438_s1 = smov 4  }
  0xa9   : > { %1978 = dma.hbm_to_vmem [thread:$0]  (!%p2759_p9), %s2755_s11, 1024, %s2763_s19, %s2765_s4, %s2437_s5, %s2437_s5, %s2438_s1  }
  0xaa   : > { %p3249_p5 = scmp.ne.s32.totalorder %s3235_s26, 0 }
  0xab   : > { %s372_s8 = sand.u32 (!%p3249_p5), 1, %s2404_s12   ;;  %p3250_p4 = scmp.ne.s32.totalorder (!%p3249_p5), %s3228_s22, 0 }
  0xac   : > { %370 = sbr.rel (%p3249_p5) target bundleno = 1032 (0x408), region = 52  ;;  %s1618_s28 = sshll.u32 (!%p3249_p5), %s372_s8, 5 }
  0xad   : > { %s373_s23 = scalar_lea.sflag (!%p3249_p5), [#allocation4], %s372_s8  ;;  %s2796_s25 = scalar_lea.vmem (!%p3249_p5), [#allocation3], %s1618_s28 }
  0xb3   : > { %2355 = dma.done.wait (%p3250_p4), %s373_s23, 512  }
  0xb4   : > { %2357 = vsyncadd (%p3250_p4), %s373_s23, 4294966784  ;;  %s3251_s24 = sld [smem:[#allocation21_spill]]  ;;  %s3252_s15 = sld [smem:[#allocation22_spill]] }
  0xb5   : > { %s383_s11 = sand.u32 1, %s2392_s9  }
  0xb6   : > { %s1619_s19 = sshll.u32 %s383_s11, 6 }
  0xb7   : > { %s2804_s4 = scalar_lea.vmem [#allocation6], %s1619_s19 }
  0xba   : > { %s381_s27 = sand.u32 1, %s3251_s24   ;;  %p3253_p9 = scmp.ne.s32.totalorder %s3252_s15, 0 }
  0xbb   : > { %s382_s26 = scalar_lea.sflag [#allocation7], %s381_s27 }
  0xbc   : > { %2359 = dma.done.wait (%p3253_p9), %s382_s26, 1024  }
  0xbd   : > { %2361 = vsyncadd (%p3253_p9), %s382_s26, 4294966272  ;;  %p3254_p6 = scmp.eq.s32.totalorder %s3251_s24, 0 }
  0xbf   : > { %2363 = dma.done.wait (%p3254_p6), [#allocation7], 2048   ;;  %p3255_p1 = pmov %p3254_p6 }
  0xc1   : > { %2365 = vsyncadd (%p3255_p1), [#allocation7], 4294965248  ;;  %p3256_p2 = pmov %p3255_p1 }
  0xc2   : > { %p3257_p3 = pmov %p3255_p1 }
  0xc3   : > { %2367 = dma.done.wait (%p3256_p2), [#allocation10], 2048  }
  0xc4   : > { %2369 = vsyncadd (%p3257_p3), [#allocation10], 4294965248  ;;  %s3258_s22 = sld [smem:[#allocation18_spill]]  ;;  %s3259_s14 = sld [smem:[#allocation20_spill]] }
  0xc5   : > { %s3260_s23 = sld [smem:[#allocation27_spill]]  ;;  %s3261_s19 = sld [smem:[#allocation28_spill]] }
  0xc6   : > { %s3262_s0 = sld [smem:[#allocation19_spill]] }
  0xca   : > { %s438_s30 = sand.u32 1, %s3258_s22   ;;  %s1623_s21 = sshll.u32 %s3259_s14, 4 }
  0xcb   : > { %s1622_s5 = sshll.u32 %s438_s30, 7  ;;  %p443_p11 = scmp.lt.s32.totalorder %s1623_s21, 31 }
  0xcc   : > { %s2832_s26 = scalar_lea.vmem [#allocation11], %s1622_s5  ;;  %p1627_p10 = scmp.ne.s32.totalorder %s3262_s0, 0 }
  0xcd   : > { %s3297_s21 = smov (!%p443_p11, %s1623_s21), 31  ;;  %v2439_v0 = vmov (!%p1627_p10), 0.0  }
  0xce   : > { %s1624_s1 = sshll.u32 %s3297_s21, 3  ;;  %460 = sbr.rel (%p1627_p10) target bundleno = 214 (0xd6), region = 72  ;;  %461 = vst [vmem:[#allocation2] sm:$0xff] (!%p1627_p10), %v2439_v0  ;;  %462 = vst [vmem:[#allocation2 + $0x8] sm:$0xff] (!%p1627_p10), %v2439_v0 }
  0xcf   : > { %s2825_s15 = scalar_lea.vmem %s3260_s23, %s1624_s1  ;;  %s2830_s24 = scalar_lea.vmem %s3261_s19, %s1624_s1  ;;  %463 = vst [vmem:[#allocation2 + $0x10] sm:$0xff] (!%p1627_p10), %v2439_v0  ;;  %464 = vst [vmem:[#allocation2 + $0x18] sm:$0xff] (!%p1627_p10), %v2439_v0 }
  0xd0   : > { %465 = vst [vmem:[#allocation2 + $0x20] sm:$0xff] (!%p1627_p10), %v2439_v0  ;;  %466 = vst [vmem:[#allocation2 + $0x28] sm:$0xff] (!%p1627_p10), %v2439_v0 }
  0xd1   : > { %467 = vst [vmem:[#allocation2 + $0x30] sm:$0xff] (!%p1627_p10), %v2439_v0  ;;  %468 = vst [vmem:[#allocation2 + $0x38] sm:$0xff] (!%p1627_p10), %v2439_v0 }
  0xd2   : > { %469 = vst [vmem:[#allocation2 + $0x40] sm:$0xff] (!%p1627_p10), %v2439_v0  ;;  %470 = vst [vmem:[#allocation2 + $0x48] sm:$0xff] (!%p1627_p10), %v2439_v0 }
  0xd3   : > { %471 = vst [vmem:[#allocation2 + $0x50] sm:$0xff] (!%p1627_p10), %v2439_v0  ;;  %472 = vst [vmem:[#allocation2 + $0x58] sm:$0xff] (!%p1627_p10), %v2439_v0 }
  0xd4   : > { %473 = vst [vmem:[#allocation2 + $0x60] sm:$0xff] (!%p1627_p10), %v2439_v0  ;;  %474 = vst [vmem:[#allocation2 + $0x68] sm:$0xff] (!%p1627_p10), %v2439_v0 }
  0xd5   : > { %475 = vst [vmem:[#allocation2 + $0x70] sm:$0xff] %v2439_v0  ;;  %476 = vst [vmem:[#allocation2 + $0x78] sm:$0xff] %v2439_v0 }
  0xd6 PF: > { %v2112_v1 = vld [vmem:[%s2804_s4] sm:$0xff]   ;;  %v2113_v2 = vld [vmem:[%s2804_s4 + $0x8] sm:$0xff]   ;;  %v2114_v3 = vld [vmem:[%s2804_s4 + $0x10] sm:$0xff]   ;;  %s3263_s0 = sld [smem:[#allocation19_spill]] }
  0xd7   : > { %1727 = vmatprep.subr.bf16.mxu0 %v2112_v1  ;;  %1935 = vmatprep.subr.bf16.mxu1 %v2112_v1  ;;  %v2115_v4 = vld [vmem:[%s2804_s4 + $0x18] sm:$0xff]   ;;  %v477_v5 = vld [vmem:[%s2796_s25] sm:$0xff]  ;;  %v479_v6 = vld [vmem:[%s2796_s25 + $0x10] sm:$0xff] }
  0xd8   : > { %1728 = vmatpush3.bf16.msra.mxu0 %v2112_v1  ;;  %1943 = vmatpush3.bf16.msra.mxu1 %v2112_v1  ;;  %v481_v7 = vunpack.c.l.s8.bf16 %v477_v5  ;;  %v485_v8 = vunpack.c.l.s8.bf16 %v479_v6  ;;  %v2116_v9 = vld [vmem:[%s2804_s4 + $0x20] sm:$0xff]   ;;  %v2117_v10 = vld [vmem:[%s2804_s4 + $0x28] sm:$0xff]   ;;  %v2118_v11 = vld [vmem:[%s2804_s4 + $0x30] sm:$0xff]   ;;  %v482_v15 = vunpack.c.h.s8.bf16 %v477_v5  ;;  %v486_v16 = vunpack.c.h.s8.bf16 %v479_v6 }
  0xd9   : > { %1729 = vmatprep.subr.bf16.mxu0 %v2113_v2  ;;  %1936 = vmatprep.subr.bf16.mxu1 %v2113_v2  ;;  %v2119_v12 = vld [vmem:[%s2804_s4 + $0x38] sm:$0xff]   ;;  %v478_v13 = vld [vmem:[%s2796_s25 + $0x8] sm:$0xff]  ;;  %v491_v21 = vld [vmem:[#allocation2 + $0x10] sm:$0xff] }
  0xda   : > { %1743 = vmatprep.mubr.bf16.mxu0 %v481_v7  ;;  %1751 = vmatprep.mubr.bf16.mxu1 %v485_v8  ;;  %v480_v14 = vld [vmem:[%s2796_s25 + $0x18] sm:$0xff]  ;;  %v483_v17 = vunpack.c.l.s8.bf16 %v478_v13  ;;  %v484_v19 = vunpack.c.h.s8.bf16 %v478_v13  ;;  %v489_v23 = vld [vmem:[#allocation2] sm:$0xff]  ;;  %v490_v33 = vld [vmem:[#allocation2 + $0x8] sm:$0xff] }
  0xdb   : > { %v487_v18 = vunpack.c.l.s8.bf16 %v480_v14  ;;  %v488_v20 = vunpack.c.h.s8.bf16 %v480_v14  ;;  %v499_v22 = vld [vmem:[#allocation2 + $0x50] sm:$0xff]  ;;  %v497_v24 = vld [vmem:[#allocation2 + $0x40] sm:$0xff]  ;;  %v492_v27 = vld [vmem:[#allocation2 + $0x18] sm:$0xff] }
  0xdc   : > { %1730 = vmatpush3.bf16.msra.mxu0 %v2113_v2  ;;  %1944 = vmatpush3.bf16.msra.mxu1 %v2113_v2  ;;  %v500_v28 = vld [vmem:[#allocation2 + $0x58] sm:$0xff]  ;;  %v498_v34 = vld [vmem:[#allocation2 + $0x48] sm:$0xff]  ;;  %v495_v45 = vld [vmem:[#allocation2 + $0x30] sm:$0xff]  ;;  %p1636_p7 = scmp.ne.s32.totalorder %s3263_s0, 1 }
  0xdd   : > { %1731 = vmatprep.subr.bf16.mxu0 %v2114_v3  ;;  %1937 = vmatprep.subr.bf16.mxu1 %v2114_v3  ;;  %v503_v46 = vld [vmem:[#allocation2 + $0x70] sm:$0xff]  ;;  %v493_v47 = vld [vmem:[#allocation2 + $0x20] sm:$0xff]  ;;  %v496_v51 = vld [vmem:[#allocation2 + $0x38] sm:$0xff]  ;;  %v2440_v7 = vmov (!%p1636_p7), 0   ;;  %s3264_s22 = sld [smem:[#allocation31_spill]] (!%p1636_p7)  ;;  %s3265_s5 = sld [smem:[#allocation32_spill]] (!%p1636_p7) }
  0xde   : > { %v501_v48 = vld [vmem:[#allocation2 + $0x60] sm:$0xff]  ;;  %v504_v52 = vld [vmem:[#allocation2 + $0x78] sm:$0xff]  ;;  %v494_v57 = vld [vmem:[#allocation2 + $0x28] sm:$0xff]  ;;  %2121 = vset.pattern.permute.xlu1 (!%p1636_p7), %v2440_v7  ;;  %2120 = vset.pattern.permute.xlu0 (!%p1636_p7), %v2440_v7 }
  0xdf   : > { %v502_v58 = vld [vmem:[#allocation2 + $0x68] sm:$0xff]  ;;  %v720_v5 = vld [vmem:[%s2825_s15 + $0x10] sm:$0xff] (!%p1636_p7)  ;;  %v718_v6 = vld [vmem:[%s2825_s15] sm:$0xff] (!%p1636_p7) }
  0xe0   : > { %1732 = vmatpush3.bf16.msra.mxu0 %v2114_v3  ;;  %1945 = vmatpush3.bf16.msra.mxu1 %v2114_v3  ;;  %v721_v8 = vld [vmem:[%s2825_s15 + $0x18] sm:$0xff] (!%p1636_p7)  ;;  %v863_v13 = vld [vmem:[#allocation8 + $0x8] sm:$0xff] (!%p1636_p7) }
  0xe1   : > { %1733 = vmatprep.subr.bf16.mxu0 %v2115_v4  ;;  %1938 = vmatprep.subr.bf16.mxu1 %v2115_v4 }
  0xe2   : > { %746 = vperm.xlu1 (!%p1636_p7), %2121, %v720_v5   ;;  %736 = vperm.xlu0 (!%p1636_p7), %2120, %v718_v6  }
  0xe4   : > { %1734 = vmatpush3.bf16.msra.mxu0 %v2115_v4  ;;  %1946 = vmatpush3.bf16.msra.mxu1 %v2115_v4 }
  0xe5   : > { %1735 = vmatprep.subr.bf16.mxu0 %v2116_v9  ;;  %1939 = vmatprep.subr.bf16.mxu1 %v2116_v9 }
  0xe6   : > { %751 = vperm.xlu1 (!%p1636_p7), %2121, %v721_v8  }
  0xe8   : > { %1736 = vmatpush3.bf16.msra.mxu0 %v2116_v9  ;;  %1947 = vmatpush3.bf16.msra.mxu1 %v2116_v9  ;;  %v719_v9 = vld [vmem:[%s2825_s15 + $0x8] sm:$0xff] (!%p1636_p7) }
  0xe9   : > { %1737 = vmatprep.subr.bf16.mxu0 %v2117_v10  ;;  %1940 = vmatprep.subr.bf16.mxu1 %v2117_v10 }
  0xea   : > { %741 = vperm.xlu0 (!%p1636_p7), %2120, %v719_v9  }
  0xec   : > { %1738 = vmatpush3.bf16.msra.mxu0 %v2117_v10  ;;  %1948 = vmatpush3.bf16.msra.mxu1 %v2117_v10  ;;  %v723_v10 = vld [vmem:[%s2825_s15 + $0x28] sm:$0xff] (!%p1636_p7) }
  0xed   : > { %1739 = vmatprep.subr.bf16.mxu0 %v2118_v11  ;;  %1941 = vmatprep.subr.bf16.mxu1 %v2118_v11 }
  0xee   : > { %761 = vperm.xlu1 (!%p1636_p7), %2121, %v723_v10   ;;  %v830_v10 = vld [vmem:[%s2830_s24] sm:$0xff] (!%p1636_p7) }
  0xf0   : > { %1740 = vmatpush3.bf16.msra.mxu0 %v2118_v11  ;;  %1949 = vmatpush3.bf16.msra.mxu1 %v2118_v11  ;;  %v722_v11 = vld [vmem:[%s2825_s15 + $0x20] sm:$0xff] (!%p1636_p7) }
  0xf1   : > { %1741 = vmatprep.subr.bf16.mxu0 %v2119_v12  ;;  %1942 = vmatprep.subr.bf16.mxu1 %v2119_v12 }
  0xf2   : > { %756 = vperm.xlu0 (!%p1636_p7), %2120, %v722_v11  }
  0xf4   : > { %1742 = vmatpush3.bf16.msra.mxu0 %v2119_v12  ;;  %1950 = vmatpush3.bf16.msra.mxu1 %v2119_v12  ;;  %v862_v12 = vld [vmem:[#allocation8] sm:$0xff] (!%p1636_p7) }
  0xf5   : > { %v1871_v14 = vpack.c.bf16 (!%p1636_p7), %v863_v13, %v862_v12 }
  0xf7   : > { %1744 = vmatmul.mubr.bf16.vlgmr.msra.gmra.mrb[0].mxu0 %v482_v15  ;;  %1752 = vmatmul.mubr.bf16.vlgmr.msra.gmra.mrb[0].mxu1 %v486_v16  ;;  %v1046_v15 = vld [vmem:[#allocation9] sm:$0xff] (!%p1636_p7)  ;;  %v1047_v16 = vld [vmem:[#allocation9 + $0x8] sm:$0xff] (!%p1636_p7) }
  0xf8   : > { %1747 = vmatprep.mubr.bf16.mxu0 %v483_v17  ;;  %1755 = vmatprep.mubr.bf16.mxu1 %v487_v18  ;;  %v864_v17 = vld [vmem:[#allocation8 + $0x10] sm:$0xff] (!%p1636_p7)  ;;  %v1903_v18 = vpack.c.bf16 (!%p1636_p7), %v1047_v16, %v1046_v15 }
  0xf9   : > { %1872 = vmatprep.subr.bf16.mxu0 (!%p1636_p7), %v1871_v14 }
  0xfa   : > { %1904 = vmatprep.subr.bf16.mxu1 (!%p1636_p7), %v1903_v18  ;;  %1874 = vmatpush3.bf16.msra.mxu0 (!%p1636_p7), %v1871_v14  ;;  %v832_v14 = vld [vmem:[%s2830_s24 + $0x10] sm:$0xff] (!%p1636_p7) }
  0xfb   : > { %1906 = vmatpush3.bf16.msra.mxu1 (!%p1636_p7), %v1903_v18 }
  0xff   : > { %1748 = vmatmul.mubr.bf16.gmra.mrb[4].mxu0 %v484_v19  ;;  %1756 = vmatmul.mubr.bf16.gmra.mrb[4].mxu1 %v488_v20  ;;  %v865_v19 = vld [vmem:[#allocation8 + $0x18] sm:$0xff] (!%p1636_p7)  ;;  %v1048_v20 = vld [vmem:[#allocation9 + $0x10] sm:$0xff] (!%p1636_p7) }
 0x161   : > { %v747_v8 = vpop.permute.xlu1 (!%p1636_p7), %746  ;;  %v737_v9 = vpop.permute.xlu0 (!%p1636_p7), %736 }
 0x1ca   : > { %v1745_v25 = vpop.f32.mrb[0].mxu0  ;;  %v1753_v26 = vpop.f32.mrb[0].mxu1 }
 0x1cb   : > { %v668_v29 = vadd.f32 %v1745_v25, %v491_v21  ;;  %v676_v30 = vadd.f32 %v1753_v26, %v499_v22  ;;  %v603_v31 = vpop.f32.mrb[1].mxu0  ;;  %v635_v32 = vpop.f32.mrb[1].mxu1  ;;  %v1049_v21 = vld [vmem:[#allocation9 + $0x18] sm:$0xff] (!%p1636_p7)  ;;  %v1875_v22 = vpack.c.bf16 (!%p1636_p7), %v865_v19, %v864_v17  ;;  %v867_v25 = vld [vmem:[#allocation8 + $0x28] sm:$0xff] (!%p1636_p7)  ;;  %v1050_v26 = vld [vmem:[#allocation9 + $0x20] sm:$0xff] (!%p1636_p7) }
 0x1cc   : > { %v666_v35 = vadd.f32 %v603_v31, %v489_v23  ;;  %v674_v36 = vadd.f32 %v635_v32, %v497_v24  ;;  %v1746_v37 = vpop.f32.mrb[2].mxu0  ;;  %v1754_v38 = vpop.f32.mrb[2].mxu1  ;;  %v1907_v23 = vpack.c.bf16 (!%p1636_p7), %v1049_v21, %v1048_v20  ;;  %v866_v24 = vld [vmem:[#allocation8 + $0x20] sm:$0xff] (!%p1636_p7)  ;;  %v868_v32 = vld [vmem:[#allocation8 + $0x30] sm:$0xff] (!%p1636_p7)  ;;  %v831_v19 = vld [vmem:[%s2830_s24 + $0x8] sm:$0xff] (!%p1636_p7) }
 0x1cd   : > { %684 = vst [vmem:[#allocation2 + $0x10] sm:$0xff] %v668_v29  ;;  %692 = vst [vmem:[#allocation2 + $0x50] sm:$0xff] %v676_v30  ;;  %v669_v39 = vadd.f32 %v1746_v37, %v492_v27  ;;  %v677_v40 = vadd.f32 %v1754_v38, %v500_v28  ;;  %v606_v41 = vpop.f32.mrb[3].mxu0  ;;  %v638_v42 = vpop.f32.mrb[3].mxu1  ;;  %v1051_v27 = vld [vmem:[#allocation9 + $0x28] sm:$0xff] (!%p1636_p7)  ;;  %v725_v28 = vld [vmem:[%s2825_s15 + $0x38] sm:$0xff] (!%p1636_p7)  ;;  %1876 = vmatprep.subr.bf16.mxu0 (!%p1636_p7), %v1875_v22  ;;  %v1879_v30 = vpack.c.bf16 (!%p1636_p7), %v867_v25, %v866_v24 }
 0x1ce   : > { %682 = vst [vmem:[#allocation2] sm:$0xff] %v666_v35  ;;  %690 = vst [vmem:[#allocation2 + $0x40] sm:$0xff] %v674_v36  ;;  %v667_v43 = vadd.f32 %v606_v41, %v490_v33  ;;  %v675_v44 = vadd.f32 %v638_v42, %v498_v34  ;;  %v724_v29 = vld [vmem:[%s2825_s15 + $0x30] sm:$0xff] (!%p1636_p7)  ;;  %1908 = vmatprep.subr.bf16.mxu1 (!%p1636_p7), %v1907_v23  ;;  %v1911_v31 = vpack.c.bf16 (!%p1636_p7), %v1051_v27, %v1050_v26  ;;  %v869_v33 = vld [vmem:[#allocation8 + $0x38] sm:$0xff] (!%p1636_p7)  ;;  %v752_v17 = vpop.permute.xlu1 (!%p1636_p7), %751  ;;  %v742_v20 = vpop.permute.xlu0 (!%p1636_p7), %741 }
 0x1cf   : > { %685 = vst [vmem:[#allocation2 + $0x18] sm:$0xff] %v669_v39  ;;  %693 = vst [vmem:[#allocation2 + $0x58] sm:$0xff] %v677_v40  ;;  %1878 = vmatpush3.bf16.msra.mxu0 (!%p1636_p7), %v1875_v22  ;;  %v1052_v34 = vld [vmem:[#allocation9 + $0x30] sm:$0xff] (!%p1636_p7)  ;;  %v1053_v35 = vld [vmem:[#allocation9 + $0x38] sm:$0xff] (!%p1636_p7)  ;;  %771 = vperm.xlu1 (!%p1636_p7), %2121, %v725_v28   ;;  %v1883_v38 = vpack.c.bf16 (!%p1636_p7), %v869_v33, %v868_v32 }
 0x1d0   : > { %683 = vst [vmem:[#allocation2 + $0x8] sm:$0xff] %v667_v43  ;;  %691 = vst [vmem:[#allocation2 + $0x48] sm:$0xff] %v675_v44  ;;  %766 = vperm.xlu0 (!%p1636_p7), %2120, %v724_v29   ;;  %v727_v36 = vld [vmem:[%s2825_s15 + $0x48] sm:$0xff] (!%p1636_p7)  ;;  %v726_v37 = vld [vmem:[%s2825_s15 + $0x40] sm:$0xff] (!%p1636_p7)  ;;  %1910 = vmatpush3.bf16.msra.mxu1 (!%p1636_p7), %v1907_v23  ;;  %v1915_v39 = vpack.c.bf16 (!%p1636_p7), %v1053_v35, %v1052_v34 }
 0x1d1   : > { %1880 = vmatprep.subr.bf16.mxu0 (!%p1636_p7), %v1879_v30  ;;  %1912 = vmatprep.subr.bf16.mxu1 (!%p1636_p7), %v1911_v31  ;;  %v870_v40 = vld [vmem:[#allocation8 + $0x40] sm:$0xff] (!%p1636_p7)  ;;  %v871_v41 = vld [vmem:[#allocation8 + $0x48] sm:$0xff] (!%p1636_p7)  ;;  %v729_v44 = vld [vmem:[%s2825_s15 + $0x58] sm:$0xff] (!%p1636_p7) }
 0x1d2   : > { %v1749_v49 = vpop.f32.mrb[4].mxu0  ;;  %v1757_v50 = vpop.f32.mrb[4].mxu1  ;;  %701 = sbr.rel (%p1636_p7) target bundleno = 1004 (0x3ec), region = 76  ;;  %v1054_v42 = vld [vmem:[#allocation9 + $0x40] sm:$0xff] (!%p1636_p7)  ;;  %v1055_v43 = vld [vmem:[#allocation9 + $0x48] sm:$0xff] (!%p1636_p7)  ;;  %v833_v29 = vld [vmem:[%s2830_s24 + $0x18] sm:$0xff] (!%p1636_p7) }
 0x1d3   : > { %v672_v53 = vadd.f32 %v1749_v49, %v495_v45  ;;  %v680_v54 = vadd.f32 %v1757_v50, %v503_v46  ;;  %v619_v55 = vpop.f32.mrb[5].mxu0  ;;  %v651_v56 = vpop.f32.mrb[5].mxu1  ;;  %1882 = vmatpush3.bf16.msra.mxu0 (!%p1636_p7), %v1879_v30  ;;  %781 = vperm.xlu1 (!%p1636_p7), %2121, %v727_v36   ;;  %v728_v45 = vld [vmem:[%s2825_s15 + $0x50] sm:$0xff] (!%p1636_p7)  ;;  %v1887_v46 = vpack.c.bf16 (!%p1636_p7), %v871_v41, %v870_v40  ;;  %v873_v49 = vld [vmem:[#allocation8 + $0x58] sm:$0xff] (!%p1636_p7) }
 0x1d4   : > { %v670_v59 = vadd.f32 %v619_v55, %v493_v47  ;;  %v678_v60 = vadd.f32 %v651_v56, %v501_v48  ;;  %v1750_v61 = vpop.f32.mrb[6].mxu0  ;;  %v1758_v62 = vpop.f32.mrb[6].mxu1  ;;  %776 = vperm.xlu0 (!%p1636_p7), %2120, %v726_v37   ;;  %1914 = vmatpush3.bf16.msra.mxu1 (!%p1636_p7), %v1911_v31  ;;  %v1919_v47 = vpack.c.bf16 (!%p1636_p7), %v1055_v43, %v1054_v42  ;;  %v872_v48 = vld [vmem:[#allocation8 + $0x50] sm:$0xff] (!%p1636_p7)  ;;  %v874_v56 = vld [vmem:[#allocation8 + $0x60] sm:$0xff] (!%p1636_p7) }
 0x1d5   : > { %688 = vst [vmem:[#allocation2 + $0x30] sm:$0xff] %v672_v53  ;;  %696 = vst [vmem:[#allocation2 + $0x70] sm:$0xff] %v680_v54  ;;  %v673_v63 = vadd.f32 %v1750_v61, %v496_v51  ;;  %v681_v0 = vadd.f32 %v1758_v62, %v504_v52  ;;  %v622_v1 = vpop.f32.mrb[7].mxu0  ;;  %v654_v2 = vpop.f32.mrb[7].mxu1  ;;  %1884 = vmatprep.subr.bf16.mxu0 (!%p1636_p7), %v1883_v38  ;;  %1916 = vmatprep.subr.bf16.mxu1 (!%p1636_p7), %v1915_v39  ;;  %v1056_v50 = vld [vmem:[#allocation9 + $0x50] sm:$0xff] (!%p1636_p7)  ;;  %v1057_v51 = vld [vmem:[#allocation9 + $0x58] sm:$0xff] (!%p1636_p7) }
 0x1d6   : > { %686 = vst [vmem:[#allocation2 + $0x20] sm:$0xff] %v670_v59  ;;  %694 = vst [vmem:[#allocation2 + $0x60] sm:$0xff] %v678_v60  ;;  %v671_v3 = vadd.f32 %v622_v1, %v494_v57  ;;  %v679_v4 = vadd.f32 %v654_v2, %v502_v58  ;;  %v731_v52 = vld [vmem:[%s2825_s15 + $0x68] sm:$0xff] (!%p1636_p7)  ;;  %v730_v53 = vld [vmem:[%s2825_s15 + $0x60] sm:$0xff] (!%p1636_p7)  ;;  %v1891_v54 = vpack.c.bf16 (!%p1636_p7), %v873_v49, %v872_v48  ;;  %v762_v30 = vpop.permute.xlu1 (!%p1636_p7), %761  ;;  %v757_v32 = vpop.permute.xlu0 (!%p1636_p7), %756 }
 0x1d7   : > { %689 = vst [vmem:[#allocation2 + $0x38] sm:$0xff] %v673_v63  ;;  %697 = vst [vmem:[#allocation2 + $0x78] sm:$0xff] %v681_v0  ;;  %1886 = vmatpush3.bf16.msra.mxu0 (!%p1636_p7), %v1883_v38  ;;  %791 = vperm.xlu1 (!%p1636_p7), %2121, %v729_v44   ;;  %v1923_v55 = vpack.c.bf16 (!%p1636_p7), %v1057_v51, %v1056_v50  ;;  %v875_v57 = vld [vmem:[#allocation8 + $0x68] sm:$0xff] (!%p1636_p7)  ;;  %v1058_v58 = vld [vmem:[#allocation9 + $0x60] sm:$0xff] (!%p1636_p7) }
 0x1d8   : > { %687 = vst [vmem:[#allocation2 + $0x28] sm:$0xff] %v671_v3  ;;  %695 = vst [vmem:[#allocation2 + $0x68] sm:$0xff] %v679_v4  ;;  %786 = vperm.xlu0 (!%p1636_p7), %2120, %v728_v45   ;;  %1918 = vmatpush3.bf16.msra.mxu1 (!%p1636_p7), %v1915_v39  ;;  %v1059_v59 = vld [vmem:[#allocation9 + $0x68] sm:$0xff] (!%p1636_p7)  ;;  %v733_v60 = vld [vmem:[%s2825_s15 + $0x78] sm:$0xff] (!%p1636_p7)  ;;  %v1895_v62 = vpack.c.bf16 (!%p1636_p7), %v875_v57, %v874_v56 }
 0x1d9   : > { %1888 = vmatprep.subr.bf16.mxu0 %v1887_v46  ;;  %1920 = vmatprep.subr.bf16.mxu1 %v1919_v47  ;;  %v732_v61 = vld [vmem:[%s2825_s15 + $0x70] sm:$0xff]  ;;  %v877_v0 = vld [vmem:[#allocation8 + $0x78] sm:$0xff]  ;;  %v1927_v1 = vpack.c.bf16 %v1059_v59, %v1058_v58  ;;  %v702_v6 = vld [vmem:[#allocation2] sm:$0xff] }
 0x1da   : > { %v876_v63 = vld [vmem:[#allocation8 + $0x70] sm:$0xff]  ;;  %v1061_v3 = vld [vmem:[#allocation9 + $0x78] sm:$0xff]  ;;  %v814_v11 = vmul.f32 %v737_v9, %v702_v6  ;;  %v703_v13 = vld [vmem:[#allocation2 + $0x8] sm:$0xff] }
 0x1db   : > { %1890 = vmatpush3.bf16.msra.mxu0 %v1887_v46  ;;  %801 = vperm.xlu1 %2121, %v731_v52   ;;  %v1060_v2 = vld [vmem:[#allocation9 + $0x70] sm:$0xff]  ;;  %v1899_v4 = vpack.c.bf16 %v877_v0, %v876_v63  ;;  %v705_v18 = vld [vmem:[#allocation2 + $0x18] sm:$0xff]  ;;  %v815_v21 = vmul.f32 %v742_v20, %v703_v13  ;;  %v834_v31 = vld [vmem:[%s2830_s24 + $0x20] sm:$0xff] }
 0x1dc   : > { %796 = vperm.xlu0 %2120, %v730_v53   ;;  %1922 = vmatpush3.bf16.msra.mxu1 %v1919_v47  ;;  %v1931_v5 = vpack.c.bf16 %v1061_v3, %v1060_v2  ;;  %v704_v7 = vld [vmem:[#allocation2 + $0x10] sm:$0xff]  ;;  %v846_v15 = vadd.f32 %v830_v10, %v814_v11  ;;  %v1030_v16 = vmul.f32 %v830_v10, %v814_v11  ;;  %v835_v38 = vld [vmem:[%s2830_s24 + $0x28] sm:$0xff]  ;;  %v710_v47 = vld [vmem:[#allocation2 + $0x40] sm:$0xff] }
 0x1dd   : > { %1892 = vmatprep.subr.bf16.mxu0 %v1891_v54  ;;  %1924 = vmatprep.subr.bf16.mxu1 %v1923_v55  ;;  %v816_v12 = vmul.f32 %v747_v8, %v704_v7  ;;  %v706_v24 = vld [vmem:[#allocation2 + $0x20] sm:$0xff]  ;;  %v817_v25 = vmul.f32 %v752_v17, %v705_v18  ;;  %v847_v26 = vadd.f32 %v831_v19, %v815_v21  ;;  %v708_v35 = vld [vmem:[#allocation2 + $0x30] sm:$0xff]  ;;  %v711_v52 = vld [vmem:[#allocation2 + $0x48] sm:$0xff] }
 0x1de   : > { %1791 = vmatprep.mubr.f32.mxu0 %v846_v15  ;;  %1847 = vmatprep.mubr.f32.mxu1 %v1030_v16  ;;  %v1031_v27 = vmul.f32 %v831_v19, %v815_v21  ;;  %v818_v33 = vmul.f32 %v757_v32, %v706_v24  ;;  %v709_v42 = vld [vmem:[#allocation2 + $0x38] sm:$0xff]  ;;  %v836_v43 = vld [vmem:[%s2830_s24 + $0x30] sm:$0xff]  ;;  %v714_v7 = vld [vmem:[#allocation2 + $0x60] sm:$0xff] }
 0x1df   : > { %1894 = vmatpush3.bf16.msra.mxu0 %v1891_v54  ;;  %811 = vperm.xlu1 %2121, %v733_v60   ;;  %v848_v22 = vadd.f32 %v832_v14, %v816_v12  ;;  %v1032_v23 = vmul.f32 %v832_v14, %v816_v12  ;;  %v707_v28 = vld [vmem:[#allocation2 + $0x28] sm:$0xff]  ;;  %v849_v36 = vadd.f32 %v833_v29, %v817_v25  ;;  %v837_v53 = vld [vmem:[%s2830_s24 + $0x38] sm:$0xff]  ;;  %v712_v59 = vld [vmem:[#allocation2 + $0x50] sm:$0xff] }
 0x1e0   : > { %806 = vperm.xlu0 %2120, %v732_v61   ;;  %1926 = vmatpush3.bf16.msra.mxu1 %v1923_v55  ;;  %v819_v34 = vmul.f32 %v762_v30, %v707_v28  ;;  %v1033_v37 = vmul.f32 %v833_v29, %v817_v25  ;;  %v850_v39 = vadd.f32 %v834_v31, %v818_v33  ;;  %v838_v55 = vld [vmem:[%s2830_s24 + $0x40] sm:$0xff]  ;;  %v713_v2 = vld [vmem:[#allocation2 + $0x58] sm:$0xff]  ;;  %v840_v3 = vld [vmem:[%s2830_s24 + $0x50] sm:$0xff] }
 0x1e1   : > { %1896 = vmatprep.subr.bf16.mxu0 %v1895_v62  ;;  %1928 = vmatprep.subr.bf16.mxu1 %v1927_v1  ;;  %v1034_v40 = vmul.f32 %v834_v31, %v818_v33  ;;  %v715_v12 = vld [vmem:[#allocation2 + $0x68] sm:$0xff]  ;;  %v841_v13 = vld [vmem:[%s2830_s24 + $0x58] sm:$0xff]  ;;  %v842_v15 = vld [vmem:[%s2830_s24 + $0x60] sm:$0xff] }
 0x1e2   : > { %v851_v46 = vadd.f32 %v835_v38, %v819_v34  ;;  %v1035_v48 = vmul.f32 %v835_v38, %v819_v34  ;;  %v716_v19 = vld [vmem:[#allocation2 + $0x70] sm:$0xff]  ;;  %v2883_v38 = vld [vmem:[%s3264_s22] ss:$0 sm:$0xff] }
 0x1e3   : > { %1898 = vmatpush3.bf16.msra.mxu0 %v1895_v62  ;;  %v839_v62 = vld [vmem:[%s2830_s24 + $0x48] sm:$0xff] }
 0x1e4   : > { %1900 = vmatprep.subr.bf16.mxu0 %v1899_v4  ;;  %1930 = vmatpush3.bf16.msra.mxu1 %v1927_v1 }
 0x1e5   : > { %1932 = vmatprep.subr.bf16.mxu1 %v1931_v5 }
 0x1e7   : > { %1902 = vmatpush3.bf16.msra.mxu0 %v1899_v4 }
 0x1e8   : > { %1934 = vmatpush3.bf16.msra.mxu1 %v1931_v5 }
 0x1ea   : > { %1792 = vmatmul.mubr.f32.vlgmr.msra.gmra.mrb[0].mxu0 %v847_v26  ;;  %v717_v26 = vld [vmem:[#allocation2 + $0x78] sm:$0xff] }
 0x1eb   : > { %1848 = vmatmul.mubr.f32.vlgmr.msra.gmra.mrb[0].mxu1 %v1031_v27  ;;  %1794 = vmatprep.mubr.f32.mxu0 %v848_v22  ;;  %v843_v22 = vld [vmem:[%s2830_s24 + $0x68] sm:$0xff]  ;;  %v844_v27 = vld [vmem:[%s2830_s24 + $0x70] sm:$0xff] }
 0x1ec   : > { %1850 = vmatprep.mubr.f32.mxu1 %v1032_v23 }
 0x1ee   : > { %1795 = vmatmul.mubr.f32.gmra.mrb[2].mxu0 %v849_v36 }
 0x1ef   : > { %1851 = vmatmul.mubr.f32.gmra.mrb[2].mxu1 %v1033_v37  ;;  %1797 = vmatprep.mubr.f32.mxu0 %v850_v39  ;;  %v2888_v39 = vld [vmem:[%s3265_s5] ss:$0 sm:$0xff] }
 0x1f0   : > { %1853 = vmatprep.mubr.f32.mxu1 %v1034_v40 }
 0x1f2   : > { %1798 = vmatmul.mubr.f32.gmra.mrb[4].mxu0 %v851_v46 }
 0x1f3   : > { %1854 = vmatmul.mubr.f32.gmra.mrb[4].mxu1 %v1035_v48 }
 0x24e   : > { %v772_v41 = vpop.permute.xlu1 %771 }
 0x24f   : > { %v767_v44 = vpop.permute.xlu0 %766  ;;  %v821_v49 = vmul.f32 %v772_v41, %v709_v42 }
 0x250   : > { %v820_v45 = vmul.f32 %v767_v44, %v708_v35  ;;  %v845_v35 = vld [vmem:[%s2830_s24 + $0x78] sm:$0xff] }
 0x251   : > { %v853_v60 = vadd.f32 %v837_v53, %v821_v49  ;;  %v1037_v61 = vmul.f32 %v837_v53, %v821_v49 }
 0x252   : > { %v852_v50 = vadd.f32 %v836_v43, %v820_v45  ;;  %v1036_v51 = vmul.f32 %v836_v43, %v820_v45  ;;  %v782_v54 = vpop.permute.xlu1 %781 }
 0x253   : > { %v777_v56 = vpop.permute.xlu0 %776  ;;  %v823_v58 = vmul.f32 %v782_v54, %v711_v52 }
 0x254   : > { %v822_v57 = vmul.f32 %v777_v56, %v710_v47  ;;  %1800 = vmatprep.mubr.f32.mxu0 %v852_v50  ;;  %1856 = vmatprep.mubr.f32.mxu1 %v1036_v51 }
 0x255   : > { %1801 = vmatmul.mubr.f32.gmra.mrb[6].mxu0 %v853_v60  ;;  %1857 = vmatmul.mubr.f32.gmra.mrb[6].mxu1 %v1037_v61  ;;  %v855_v6 = vadd.f32 %v839_v62, %v823_v58  ;;  %v1039_v8 = vmul.f32 %v839_v62, %v823_v58 }
 0x256   : > { %v854_v63 = vadd.f32 %v838_v55, %v822_v57  ;;  %v1038_v0 = vmul.f32 %v838_v55, %v822_v57  ;;  %v792_v1 = vpop.permute.xlu1 %791 }
 0x257   : > { %v787_v4 = vpop.permute.xlu0 %786  ;;  %v825_v9 = vmul.f32 %v792_v1, %v713_v2 }
 0x258   : > { %v824_v5 = vmul.f32 %v787_v4, %v712_v59  ;;  %1803 = vmatprep.mubr.f32.mxu0 %v854_v63  ;;  %1859 = vmatprep.mubr.f32.mxu1 %v1038_v0 }
 0x259   : > { %1804 = vmatmul.mubr.f32.gmra.mrb[8].mxu0 %v855_v6  ;;  %1860 = vmatmul.mubr.f32.gmra.mrb[8].mxu1 %v1039_v8  ;;  %v857_v20 = vadd.f32 %v841_v13, %v825_v9  ;;  %v1041_v21 = vmul.f32 %v841_v13, %v825_v9 }
 0x25a   : > { %v856_v10 = vadd.f32 %v840_v3, %v824_v5  ;;  %v1040_v11 = vmul.f32 %v840_v3, %v824_v5  ;;  %v802_v14 = vpop.permute.xlu1 %801 }
 0x25b   : > { %v797_v16 = vpop.permute.xlu0 %796  ;;  %v827_v18 = vmul.f32 %v802_v14, %v715_v12 }
 0x25c   : > { %v826_v17 = vmul.f32 %v797_v16, %v714_v7  ;;  %1806 = vmatprep.mubr.f32.mxu0 %v856_v10  ;;  %1862 = vmatprep.mubr.f32.mxu1 %v1040_v11 }
 0x25d   : > { %1807 = vmatmul.mubr.f32.gmra.mrb[10].mxu0 %v857_v20  ;;  %1863 = vmatmul.mubr.f32.gmra.mrb[10].mxu1 %v1041_v21  ;;  %v859_v30 = vadd.f32 %v843_v22, %v827_v18  ;;  %v1043_v31 = vmul.f32 %v843_v22, %v827_v18 }
 0x25e   : > { %v858_v23 = vadd.f32 %v842_v15, %v826_v17  ;;  %v1042_v24 = vmul.f32 %v842_v15, %v826_v17  ;;  %v812_v25 = vpop.permute.xlu1 %811 }
 0x25f   : > { %v807_v28 = vpop.permute.xlu0 %806  ;;  %v829_v32 = vmul.f32 %v812_v25, %v717_v26 }
 0x260   : > { %v828_v29 = vmul.f32 %v807_v28, %v716_v19  ;;  %1809 = vmatprep.mubr.f32.mxu0 %v858_v23  ;;  %1865 = vmatprep.mubr.f32.mxu1 %v1042_v24 }
 0x261   : > { %1810 = vmatmul.mubr.f32.gmra.mrb[12].mxu0 %v859_v30  ;;  %1866 = vmatmul.mubr.f32.gmra.mrb[12].mxu1 %v1043_v31  ;;  %v861_v36 = vadd.f32 %v845_v35, %v829_v32  ;;  %v1045_v37 = vmul.f32 %v845_v35, %v829_v32 }
 0x262   : > { %v860_v33 = vadd.f32 %v844_v27, %v828_v29  ;;  %v1044_v34 = vmul.f32 %v844_v27, %v828_v29 }
 0x264   : > { %1812 = vmatprep.mubr.f32.mxu0 %v860_v33  ;;  %1868 = vmatprep.mubr.f32.mxu1 %v1044_v34 }
 0x265   : > { %1813 = vmatmul.mubr.f32.gmra.mrb[14].mxu0 %v861_v36  ;;  %1869 = vmatmul.mubr.f32.gmra.mrb[14].mxu1 %v1045_v37 }
 0x2bd   : > { %v1793_v40 = vpop.f32.mrb[0].mxu0 }
 0x2be   : > { %v1849_v41 = vpop.f32.mrb[0].mxu1  ;;  %v957_v42 = vadd.f32 %v1793_v40, %v2883_v38  ;;  %v951_v44 = vpop.f32.mrb[1].mxu0 }
 0x2bf   : > { %v1141_v43 = vadd.f32 %v1849_v41, %v2888_v39  ;;  %v1135_v45 = vpop.f32.mrb[1].mxu1  ;;  %v952_v46 = vadd.f32 %v2883_v38, %v951_v44 }
 0x2c0   : > { %v1136_v47 = vadd.f32 %v2888_v39, %v1135_v45  ;;  %vm1215_vm0 = vcmp.ge.f32.partialorder %v957_v42, 0.0  ;;  %v1231_v48 = vmul.f32 0.01, %v957_v42 }
 0x2c1   : > { %vm1263_vm1 = vcmp.ge.f32.partialorder %v1141_v43, 0.0  ;;  %v1279_v49 = vmul.f32 0.01, %v1141_v43  ;;  %vm1214_vm2 = vcmp.ge.f32.partialorder %v952_v46, 0.0  ;;  %v1230_v50 = vmul.f32 0.01, %v952_v46 }
 0x2c2   : > { %vm1262_vm3 = vcmp.ge.f32.partialorder %v1136_v47, 0.0  ;;  %v1278_v51 = vmul.f32 0.01, %v1136_v47  ;;  %v1796_v52 = vpop.f32.mrb[2].mxu0  ;;  %v1852_v53 = vpop.f32.mrb[2].mxu1  ;;  %v1247_v54 = vsel %vm1215_vm0, %v957_v42, %v1231_v48 }
 0x2c3   : > { %v1295_v55 = vsel %vm1263_vm1, %v1141_v43, %v1279_v49  ;;  %v967_v56 = vadd.f32 %v1796_v52, %v2883_v38  ;;  %v1151_v57 = vadd.f32 %v1852_v53, %v2888_v39  ;;  %v961_v58 = vpop.f32.mrb[3].mxu0  ;;  %v1145_v59 = vpop.f32.mrb[3].mxu1  ;;  %v1246_v63 = vsel %vm1214_vm2, %v952_v46, %v1230_v50 }
 0x2c4   : > { %v2896_v60 = vadd.f32 %v1295_v55, %v1247_v54  ;;  %v962_v61 = vadd.f32 %v2883_v38, %v961_v58  ;;  %v1146_v62 = vadd.f32 %v2888_v39, %v1145_v59  ;;  %v1294_v0 = vsel %vm1262_vm3, %v1136_v47, %v1278_v51 }
 0x2c5   : > { %vm1217_vm4 = vcmp.ge.f32.partialorder %v967_v56, 0.0  ;;  %v1233_v1 = vmul.f32 0.01, %v967_v56  ;;  %vm1265_vm5 = vcmp.ge.f32.partialorder %v1151_v57, 0.0  ;;  %v1281_v2 = vmul.f32 0.01, %v1151_v57 }
 0x2c6   : > { %vm1216_vm6 = vcmp.ge.f32.partialorder %v962_v61, 0.0  ;;  %v1232_v3 = vmul.f32 0.01, %v962_v61  ;;  %vm1264_vm7 = vcmp.ge.f32.partialorder %v1146_v62, 0.0  ;;  %v1280_v4 = vmul.f32 0.01, %v1146_v62 }
 0x2c7   : > { %v1799_v5 = vpop.f32.mrb[4].mxu0  ;;  %v1855_v6 = vpop.f32.mrb[4].mxu1  ;;  %v1327_v7 = vmul.f32 %v2896_v60, %v2896_v60  ;;  %v2902_v8 = vadd.f32 %v1294_v0, %v1246_v63  ;;  %v1249_v9 = vsel %vm1217_vm4, %v967_v56, %v1233_v1  ;;  %v1297_v10 = vsel %vm1265_vm5, %v1151_v57, %v1281_v2 }
 0x2c8   : > { %v2905_v11 = vadd.f32 %v1799_v5, %v2883_v38  ;;  %v971_v12 = vpop.f32.mrb[5].mxu0  ;;  %v1155_v13 = vpop.f32.mrb[5].mxu1  ;;  %v2907_v14 = vadd.f32 %v1297_v10, %v1249_v9  ;;  %v1248_v15 = vsel %vm1216_vm6, %v962_v61, %v1232_v3  ;;  %v1296_v21 = vsel %vm1264_vm7, %v1146_v62, %v1280_v4 }
 0x2c9   : > { %v972_v16 = vadd.f32 %v2883_v38, %v971_v12  ;;  %v1156_v17 = vadd.f32 %v2888_v39, %v1155_v13  ;;  %1344 = vadd.xlane.f32.xlu1 %v1327_v7  ;;  %v1326_v18 = vmul.f32 %v2902_v8, %v2902_v8  ;;  %v1161_v22 = vadd.f32 %v1855_v6, %v2888_v39 }
 0x2ca   : > { %vm1219_vm8 = vcmp.ge.f32.partialorder %v2905_v11, 0.0  ;;  %v1235_v25 = vmul.f32 0.01, %v2905_v11  ;;  %v1329_v29 = vmul.f32 %v2907_v14, %v2907_v14  ;;  %v2922_v30 = vadd.f32 %v1296_v21, %v1248_v15 }
 0x2cb   : > { %vm1218_vm9 = vcmp.ge.f32.partialorder %v972_v16, 0.0  ;;  %v1234_v23 = vmul.f32 0.01, %v972_v16  ;;  %vm1266_vm10 = vcmp.ge.f32.partialorder %v1156_v17, 0.0  ;;  %v1282_v24 = vmul.f32 0.01, %v1156_v17  ;;  %1342 = vadd.xlane.f32.xlu0 %v1326_v18 }
 0x2cc   : > { %vm1267_vm11 = vcmp.ge.f32.partialorder %v1161_v22, 0.0  ;;  %v1283_v37 = vmul.f32 0.01, %v1161_v22  ;;  %v1328_v49 = vmul.f32 %v2922_v30, %v2922_v30  ;;  %v1251_v6 = vsel %vm1219_vm8, %v2905_v11, %v1235_v25 }
 0x2cd   : > { %v1250_v35 = vsel %vm1218_vm9, %v972_v16, %v1234_v23  ;;  %v1298_v36 = vsel %vm1266_vm10, %v1156_v17, %v1282_v24 }
 0x2ce   : > { %v2938_v48 = vadd.f32 %v1298_v36, %v1250_v35  ;;  %v1299_v7 = vsel %vm1267_vm11, %v1161_v22, %v1283_v37 }
 0x2cf   : > { %1348 = vadd.xlane.f32.xlu0 %v1329_v29  ;;  %v2979_v17 = vadd.f32 %v1299_v7, %v1251_v6 }
 0x2d0   : > { %v1330_v62 = vmul.f32 %v2938_v48, %v2938_v48 }
 0x2d1   : > { %v1331_v29 = vmul.f32 %v2979_v17, %v2979_v17 }
 0x2d2   : > { %1350 = vadd.xlane.f32.xlu1 %v1330_v62 }
 0x2d3   : > { %1346 = vadd.xlane.f32.xlu0 %v1328_v49 }
 0x2d7   : > { %1352 = vadd.xlane.f32.xlu0 %v1331_v29 }
 0x328   : > { %v1802_v19 = vpop.f32.mrb[6].mxu0  ;;  %v1858_v20 = vpop.f32.mrb[6].mxu1 }
 0x329   : > { %v2918_v26 = vadd.f32 %v1802_v19, %v2883_v38  ;;  %v981_v27 = vpop.f32.mrb[7].mxu0  ;;  %v1165_v28 = vpop.f32.mrb[7].mxu1  ;;  %v2930_v41 = vadd.f32 %v1858_v20, %v2888_v39 }
 0x32a   : > { %v982_v31 = vadd.f32 %v2883_v38, %v981_v27  ;;  %v1166_v32 = vadd.f32 %v2888_v39, %v1165_v28 }
 0x32b   : > { %v2927_v40 = vmul.f32 0.01, %v2918_v26  ;;  %vm1221_vm14 = vcmp.ge.f32.partialorder %v2918_v26, 0.0  ;;  %vm1269_vm15 = vcmp.ge.f32.partialorder %v2930_v41, 0.0  ;;  %v1285_v56 = vmul.f32 0.01, %v2930_v41 }
 0x32c   : > { %v1805_v33 = vpop.f32.mrb[8].mxu0  ;;  %v1861_v34 = vpop.f32.mrb[8].mxu1  ;;  %vm1220_vm12 = vcmp.ge.f32.partialorder %v982_v31, 0.0  ;;  %v1236_v42 = vmul.f32 0.01, %v982_v31  ;;  %vm1268_vm13 = vcmp.ge.f32.partialorder %v1166_v32, 0.0 }
 0x32d   : > { %v1284_v43 = vmul.f32 0.01, %v1166_v32  ;;  %v2933_v44 = vadd.f32 %v1805_v33, %v2883_v38  ;;  %v2936_v45 = vadd.f32 %v1861_v34, %v2888_v39  ;;  %v991_v46 = vpop.f32.mrb[9].mxu0  ;;  %v1175_v47 = vpop.f32.mrb[9].mxu1 }
 0x32e   : > { %v992_v50 = vadd.f32 %v2883_v38, %v991_v46  ;;  %v1176_v51 = vadd.f32 %v2888_v39, %v1175_v47  ;;  %v1252_v54 = vsel %vm1220_vm12, %v982_v31, %v1236_v42  ;;  %v1253_v42 = vsel %vm1221_vm14, %v2918_v26, %v2927_v40 }
 0x32f   : > { %v1300_v55 = vsel %vm1268_vm13, %v1166_v32, %v1284_v43  ;;  %v2948_v57 = vmul.f32 0.01, %v2933_v44  ;;  %v2951_v58 = vmul.f32 0.01, %v2936_v45  ;;  %vm1223_vm0 = vcmp.ge.f32.partialorder %v2933_v44, 0.0 }
 0x330   : > { %v1808_v52 = vpop.f32.mrb[10].mxu0  ;;  %v1864_v53 = vpop.f32.mrb[10].mxu1  ;;  %v1238_v59 = vmul.f32 0.01, %v992_v50  ;;  %v1286_v61 = vmul.f32 0.01, %v1176_v51  ;;  %v2961_v3 = vadd.f32 %v1300_v55, %v1252_v54  ;;  %v1301_v43 = vsel %vm1269_vm15, %v2930_v41, %v1285_v56 }
 0x331   : > { %v2956_v63 = vadd.f32 %v1808_v52, %v2883_v38  ;;  %v2959_v0 = vadd.f32 %v1864_v53, %v2888_v39  ;;  %v1001_v1 = vpop.f32.mrb[11].mxu0  ;;  %v1185_v2 = vpop.f32.mrb[11].mxu1  ;;  %vm1271_vm1 = vcmp.ge.f32.partialorder %v2936_v45, 0.0  ;;  %vm1222_vm2 = vcmp.ge.f32.partialorder %v992_v50, 0.0 }
 0x332   : > { %v1002_v4 = vadd.f32 %v2883_v38, %v1001_v1  ;;  %v1186_v5 = vadd.f32 %v2888_v39, %v1185_v2  ;;  %vm1270_vm3 = vcmp.ge.f32.partialorder %v1176_v51, 0.0  ;;  %v1332_v16 = vmul.f32 %v2961_v3, %v2961_v3 }
 0x333   : > { %v1241_v12 = vmul.f32 0.01, %v2956_v63  ;;  %v2973_v13 = vmul.f32 0.01, %v2959_v0  ;;  %vm1225_vm4 = vcmp.ge.f32.partialorder %v2956_v63, 0.0  ;;  %vm1273_vm7 = vcmp.ge.f32.partialorder %v2959_v0, 0.0 }
 0x334   : > { %v1811_v9 = vpop.f32.mrb[12].mxu0  ;;  %v1867_v10 = vpop.f32.mrb[12].mxu1  ;;  %vm1224_vm5 = vcmp.ge.f32.partialorder %v1002_v4, 0.0  ;;  %v1240_v11 = vmul.f32 0.01, %v1002_v4  ;;  %vm1272_vm6 = vcmp.ge.f32.partialorder %v1186_v5, 0.0  ;;  %v1254_v24 = vsel %vm1222_vm2, %v992_v50, %v1238_v59  ;;  %1354 = vadd.xlane.f32.xlu1 %v1332_v16 }
 0x335   : > { %v1288_v15 = vmul.f32 0.01, %v1186_v5  ;;  %v1017_v18 = vadd.f32 %v1811_v9, %v2883_v38  ;;  %v2983_v19 = vadd.f32 %v1867_v10, %v2888_v39  ;;  %v1011_v20 = vpop.f32.mrb[13].mxu0  ;;  %v1195_v21 = vpop.f32.mrb[13].mxu1  ;;  %v1302_v25 = vsel %vm1270_vm3, %v1176_v51, %v1286_v61 }
 0x336   : > { %v1012_v22 = vadd.f32 %v2883_v38, %v1011_v20  ;;  %v1196_v23 = vadd.f32 %v2888_v39, %v1195_v21  ;;  %v2993_v37 = vadd.f32 %v1302_v25, %v1254_v24  ;;  %v3002_v46 = vadd.f32 %v1301_v43, %v1253_v42 }
 0x337   : > { %vm1227_vm8 = vcmp.ge.f32.partialorder %v1017_v18, 0.0  ;;  %v1243_v31 = vmul.f32 0.01, %v1017_v18  ;;  %vm1275_vm9 = vcmp.ge.f32.partialorder %v2983_v19, 0.0  ;;  %v1291_v34 = vmul.f32 0.01, %v2983_v19 }
 0x338   : > { %v1814_v27 = vpop.f32.mrb[14].mxu0  ;;  %v1870_v28 = vpop.f32.mrb[14].mxu1  ;;  %vm1226_vm10 = vcmp.ge.f32.partialorder %v1012_v22, 0.0  ;;  %v1242_v35 = vmul.f32 0.01, %v1012_v22  ;;  %vm1274_vm11 = vcmp.ge.f32.partialorder %v1196_v23, 0.0  ;;  %v1334_v51 = vmul.f32 %v2993_v37, %v2993_v37 }
 0x339   : > { %v1021_v32 = vpop.f32.mrb[15].mxu0  ;;  %v1205_v33 = vpop.f32.mrb[15].mxu1  ;;  %v1290_v36 = vmul.f32 0.01, %v1196_v23  ;;  %v1027_v47 = vadd.f32 %v1814_v27, %v2883_v38  ;;  %v1211_v49 = vadd.f32 %v1870_v28, %v2888_v39  ;;  %v1256_v53 = vsel %vm1224_vm5, %v1002_v4, %v1240_v11 }
 0x33a   : > { %v1022_v50 = vadd.f32 %v2883_v38, %v1021_v32  ;;  %v1206_v52 = vadd.f32 %v2888_v39, %v1205_v33  ;;  %v1304_v26 = vsel %vm1272_vm6, %v1186_v5, %v1288_v15  ;;  %v1333_v40 = vmul.f32 %v3002_v46, %v3002_v46  ;;  %1358 = vadd.xlane.f32.xlu1 %v1334_v51 }
 0x33b   : > { %vm1229_vm12 = vcmp.ge.f32.partialorder %v1027_v47, 0.0  ;;  %v1245_v41 = vmul.f32 0.01, %v1027_v47  ;;  %vm1277_vm13 = vcmp.ge.f32.partialorder %v1211_v49, 0.0  ;;  %v1293_v54 = vmul.f32 0.01, %v1211_v49 }
 0x33c   : > { %vm1228_vm14 = vcmp.ge.f32.partialorder %v1022_v50, 0.0  ;;  %v1244_v55 = vmul.f32 0.01, %v1022_v50  ;;  %vm1276_vm15 = vcmp.ge.f32.partialorder %v1206_v52, 0.0  ;;  %1356 = vadd.xlane.f32.xlu0 %v1333_v40  ;;  %v1292_v38 = vmul.f32 0.01, %v1206_v52 }
 0x33d   : > { %v3014_v56 = vadd.f32 %v1304_v26, %v1256_v53  ;;  %v1255_v39 = vsel %vm1223_vm0, %v2933_v44, %v2948_v57  ;;  %v1303_v59 = vsel %vm1271_vm1, %v2936_v45, %v2951_v58  ;;  %v1258_v62 = vsel %vm1226_vm10, %v1012_v22, %v1242_v35 }
 0x33e   : > { %v3024_v61 = vadd.f32 %v1303_v59, %v1255_v39  ;;  %v1306_v1 = vsel %vm1274_vm11, %v1196_v23, %v1290_v36  ;;  %v1257_v2 = vsel %vm1225_vm4, %v2956_v63, %v1241_v12  ;;  %v1305_v44 = vsel %vm1273_vm7, %v2959_v0, %v2973_v13 }
 0x33f   : > { %v1336_v4 = vmul.f32 %v3014_v56, %v3014_v56  ;;  %v3033_v5 = vadd.f32 %v1306_v1, %v1258_v62  ;;  %v1260_v45 = vsel %vm1228_vm14, %v1022_v50, %v1244_v55  ;;  %v3041_v58 = vadd.f32 %v1305_v44, %v1257_v2 }
 0x340   : > { %v1335_v57 = vmul.f32 %v3024_v61, %v3024_v61  ;;  %v1308_v6 = vsel %vm1276_vm15, %v1206_v52, %v1292_v38  ;;  %v1259_v63 = vsel %vm1227_vm8, %v1017_v18, %v1243_v31  ;;  %v1307_v0 = vsel %vm1275_vm9, %v2983_v19, %v1291_v34 }
 0x341   : > { %1362 = vadd.xlane.f32.xlu1 %v1336_v4  ;;  %v1338_v7 = vmul.f32 %v3033_v5, %v3033_v5  ;;  %v3047_v9 = vadd.f32 %v1308_v6, %v1260_v45  ;;  %v1261_v10 = vsel %vm1229_vm12, %v1027_v47, %v1245_v41  ;;  %v3053_v12 = vadd.f32 %v1307_v0, %v1259_v63 }
 0x342   : > { %1360 = vadd.xlane.f32.xlu0 %v1335_v57  ;;  %v1309_v13 = vsel %vm1277_vm13, %v1211_v49, %v1293_v54  ;;  %v1337_v15 = vmul.f32 %v3041_v58, %v3041_v58 }
 0x343   : > { %v3056_v11 = vadd.f32 %v1309_v13, %v1261_v10  ;;  %v1340_v16 = vmul.f32 %v3047_v9, %v3047_v9  ;;  %v1339_v18 = vmul.f32 %v3053_v12, %v3053_v12 }
 0x345   : > { %1366 = vadd.xlane.f32.xlu1 %v1338_v7  ;;  %v1341_v19 = vmul.f32 %v3056_v11, %v3056_v11 }
 0x346   : > { %1364 = vadd.xlane.f32.xlu0 %v1337_v15 }
 0x349   : > { %1370 = vadd.xlane.f32.xlu1 %v1340_v16 }
 0x34a   : > { %1368 = vadd.xlane.f32.xlu0 %v1339_v18 }
 0x34e   : > { %1372 = vadd.xlane.f32.xlu0 %v1341_v19 }
 0x356   : > { %v1345_v20 = vpop.xlane.xlu1 %1344 }
 0x357   : > { %v1375_v21 = vmax.f32 %v1345_v20, 1e-24 }
 0x358   : > { %v1343_v22 = vpop.xlane.xlu0 %1342 }
 0x359   : > { %2122 = vrsqrt.f32 %v1375_v21  ;;  %v1374_v23 = vmax.f32 %v1343_v22, 1e-24 }
 0x35b   : > { %2124 = vrsqrt.f32 %v1374_v23 }
 0x35c   : > { %v1349_v24 = vpop.xlane.xlu0 %1348 }
 0x35d   : > { %v1377_v25 = vmax.f32 %v1349_v24, 1e-24 }
 0x35f   : > { %2126 = vrsqrt.f32 %v1377_v25  ;;  %v1351_v31 = vpop.xlane.xlu1 %1350 }
 0x360   : > { %v1347_v27 = vpop.xlane.xlu0 %1346  ;;  %v1378_v33 = vmax.f32 %v1351_v31, 1e-24 }
 0x361   : > { %v1376_v28 = vmax.f32 %v1347_v27, 1e-24 }
 0x363   : > { %v2123_v29 = vpop.eup %2122  ;;  %2128 = vrsqrt.f32 %v1376_v28 }
 0x364   : > { %v1407_v32 = vmul.f32 %v2123_v29, %v2896_v60  ;;  %2130 = vrsqrt.f32 %v1378_v33  ;;  %v1353_v47 = vpop.xlane.xlu0 %1352 }
 0x365   : > { %v2125_v34 = vpop.eup %2124  ;;  %v1379_v50 = vmax.f32 %v1353_v47, 1e-24 }
 0x366   : > { %1423 = vst [vmem:[%s2832_s26 + $0x8] sm:$0xff] %v1407_v32  ;;  %v1406_v35 = vmul.f32 %v2125_v34, %v2902_v8 }
 0x368   : > { %1422 = vst [vmem:[%s2832_s26] sm:$0xff] %v1406_v35 }
 0x369   : > { %v2127_v43 = vpop.eup %2126 }
 0x36a   : > { %v1409_v49 = vmul.f32 %v2127_v43, %v2907_v14 }
 0x36c   : > { %1425 = vst [vmem:[%s2832_s26 + $0x18] sm:$0xff] %v1409_v49 }
 0x36d   : > { %v2129_v60 = vpop.eup %2128 }
 0x36e   : > { %v1408_v52 = vmul.f32 %v2129_v60, %v2922_v30  ;;  %v2131_v40 = vpop.eup %2130 }
 0x36f   : > { %v1410_v41 = vmul.f32 %v2131_v40, %v2938_v48 }
 0x370   : > { %1424 = vst [vmem:[%s2832_s26 + $0x10] sm:$0xff] %v1408_v52 }
 0x371   : > { %1426 = vst [vmem:[%s2832_s26 + $0x20] sm:$0xff] %v1410_v41 }
 0x3c1   : > { %v1355_v36 = vpop.xlane.xlu1 %1354 }
 0x3c2   : > { %v1380_v42 = vmax.f32 %v1355_v36, 1e-24 }
 0x3c4   : > { %2132 = vrsqrt.f32 %v1380_v42 }
 0x3c5   : > { %2134 = vrsqrt.f32 %v1379_v50 }
 0x3c7   : > { %v1359_v51 = vpop.xlane.xlu1 %1358 }
 0x3c8   : > { %v1382_v53 = vmax.f32 %v1359_v51, 1e-24 }
 0x3c9   : > { %v1357_v8 = vpop.xlane.xlu0 %1356 }
 0x3ca   : > { %v1381_v26 = vmax.f32 %v1357_v8, 1e-24  ;;  %2136 = vrsqrt.f32 %v1382_v53 }
 0x3cc   : > { %2138 = vrsqrt.f32 %v1381_v26 }
 0x3ce   : > { %v1363_v14 = vpop.xlane.xlu1 %1362  ;;  %v2133_v38 = vpop.eup %2132 }
 0x3cf   : > { %v1384_v54 = vmax.f32 %v1363_v14, 1e-24  ;;  %v1361_v55 = vpop.xlane.xlu0 %1360  ;;  %v1412_v59 = vmul.f32 %v2133_v38, %v2961_v3  ;;  %v2135_v30 = vpop.eup %2134 }
 0x3d0   : > { %v1383_v39 = vmax.f32 %v1361_v55, 1e-24  ;;  %v1411_v1 = vmul.f32 %v2135_v30, %v2979_v17 }
 0x3d1   : > { %2140 = vrsqrt.f32 %v1384_v54  ;;  %1428 = vst [vmem:[%s2832_s26 + $0x30] sm:$0xff] %v1412_v59 }
 0x3d2   : > { %2142 = vrsqrt.f32 %v1383_v39  ;;  %v1367_v62 = vpop.xlane.xlu1 %1366  ;;  %1427 = vst [vmem:[%s2832_s26 + $0x28] sm:$0xff] %v1411_v1 }
 0x3d3   : > { %v1386_v2 = vmax.f32 %v1367_v62, 1e-24  ;;  %v1365_v48 = vpop.xlane.xlu0 %1364 }
 0x3d4   : > { %v1385_v4 = vmax.f32 %v1365_v48, 1e-24  ;;  %v2137_v44 = vpop.eup %2136 }
 0x3d5   : > { %2144 = vrsqrt.f32 %v1386_v2  ;;  %v1414_v3 = vmul.f32 %v2137_v44, %v2993_v37 }
 0x3d6   : > { %2146 = vrsqrt.f32 %v1385_v4  ;;  %v1371_v45 = vpop.xlane.xlu1 %1370  ;;  %v2139_v57 = vpop.eup %2138 }
 0x3d7   : > { %v1388_v6 = vmax.f32 %v1371_v45, 1e-24  ;;  %v1369_v63 = vpop.xlane.xlu0 %1368  ;;  %v1413_v7 = vmul.f32 %v2139_v57, %v3002_v46  ;;  %1430 = vst [vmem:[%s2832_s26 + $0x40] sm:$0xff] %v1414_v3 }
 0x3d8   : > { %v1387_v0 = vmax.f32 %v1369_v63, 1e-24 }
 0x3d9   : > { %2148 = vrsqrt.f32 %v1388_v6  ;;  %1429 = vst [vmem:[%s2832_s26 + $0x38] sm:$0xff] %v1413_v7 }
 0x3da   : > { %2150 = vrsqrt.f32 %v1387_v0 }
 0x3db   : > { %v2141_v17 = vpop.eup %2140  ;;  %v1373_v10 = vpop.xlane.xlu0 %1372 }
 0x3dc   : > { %v2143_v13 = vpop.eup %2142  ;;  %v1416_v15 = vmul.f32 %v2141_v17, %v3014_v56  ;;  %v1389_v16 = vmax.f32 %v1373_v10, 1e-24 }
 0x3dd   : > { %v1415_v37 = vmul.f32 %v2143_v13, %v3024_v61 }
 0x3de   : > { %1432 = vst [vmem:[%s2832_s26 + $0x50] sm:$0xff] %v1416_v15  ;;  %2152 = vrsqrt.f32 %v1389_v16 }
 0x3df   : > { %v2145_v46 = vpop.eup %2144  ;;  %1431 = vst [vmem:[%s2832_s26 + $0x48] sm:$0xff] %v1415_v37 }
 0x3e0   : > { %v2147_v18 = vpop.eup %2146  ;;  %v1418_v19 = vmul.f32 %v2145_v46, %v3033_v5 }
 0x3e1   : > { %v1417_v20 = vmul.f32 %v2147_v18, %v3041_v58 }
 0x3e2   : > { %1434 = vst [vmem:[%s2832_s26 + $0x60] sm:$0xff] %v1418_v19 }
 0x3e3   : > { %v2149_v21 = vpop.eup %2148  ;;  %1433 = vst [vmem:[%s2832_s26 + $0x58] sm:$0xff] %v1417_v20 }
 0x3e4   : > { %v2151_v22 = vpop.eup %2150  ;;  %v1420_v56 = vmul.f32 %v2149_v21, %v3047_v9 }
 0x3e5   : > { %v1419_v23 = vmul.f32 %v2151_v22, %v3053_v12 }
 0x3e6   : > { %1436 = vst [vmem:[%s2832_s26 + $0x70] sm:$0xff] %v1420_v56 }
 0x3e7   : > { %1435 = vst [vmem:[%s2832_s26 + $0x68] sm:$0xff] %v1419_v23 }
 0x3e8   : > { %v2153_v61 = vpop.eup %2152 }
 0x3e9   : > { %v1421_v24 = vmul.f32 %v2153_v61, %v3056_v11 }
 0x3eb   : > { %1437 = vst [vmem:[%s2832_s26 + $0x78] sm:$0xff] %v1421_v24 }
 0x3ec PF: > { %s3266_s1 = sld [smem:[#allocation20_spill]]  ;;  %s3268_s28 = sld [smem:[#allocation23_spill]] }
 0x3ed   : > { %s3269_s11 = sld [smem:[#allocation33_spill]]  ;;  %s1452_s0 = sshll.u32 %s2832_s26, 4  ;;  %s3105_s0 = int_to_ptr.vmem [resolvable:$true] %s1452_s0 }
 0x3ee   : > { %s3109_s25 = scalar_lea.sflag [#allocation5], %s438_s30  ;;  %s2270_s4 = scalar_lea.vmem %s3105_s0, 2048 }
 0x3ef   : > { %p2271_p0 = scmp.ne.s32.totalorder %s3105_s0, %s2270_s4  ;;  %s2441_s22 = smov [#allocation11]  }
 0x3f0   : > { %s2274_s14 = sshll.u32 %s2441_s22, 4  ;;  %s2275_s14 = int_to_ptr.vmem [resolvable:$false] %s2274_s14 }
 0x3f1   : > { %s2276_s21 = scalar_lea.vmem %s2275_s14, 4096  ;;  %p2277_p5 = scmp.lt.s32.totalorder %s3105_s0, %s2275_s14 }
 0x3f2   : > { %s1646_s23 = sshll.u32 %s3266_s1, 11  ;;  %p3271_p13 = scmp.ne.s32.totalorder %s3268_s28, 0 }
 0x3f3   : > { %s3270_s19 = smov %s3269_s11  ;;  %s3102_s24 = scalar_lea.hbm %s3269_s11, %s1646_s23 }
 0x3f4   : > { %p2272_p8 = pnand %p2271_p0, %p3271_p13  ;;  %p2278_p4 = scmp.lt.s32.totalorder %s2276_s21, %s2270_s4 }
 0x3f6   : > { %p2273_p12 = pneg %p2272_p8  ;;  %p2279_p9 = por %p2278_p4, %p2277_p5 }
 0x3f8   : > { %p2280_p6 = pnand %p2279_p9, %p2273_p12 }
 0x3fa   : > { %2283 = shalt.err (!%p2280_p6)
}
 0x3fb   : > { %s2284_s30 = scalar_lea.hbm %s3102_s24, 2048  ;;  %s2288_s1 = scalar_lea.hbm %s3270_s19, 4096 }
 0x3fc   : > { %p2285_p1 = scmp.ne.s32.totalorder %s3102_s24, %s2284_s30  ;;  %p2289_p11 = scmp.lt.u32.totalorder %s3102_s24, %s3270_s19 }
 0x3fd   : > { %p2290_p10 = scmp.lt.u32.totalorder %s2288_s1, %s2284_s30  ;;  %p2292_p0 = scmp.lt.u32.totalorder %s2284_s30, %s3102_s24 }
 0x3fe   : > { %p2286_p2 = pnand %p2285_p1, %p3271_p13 }
 0x3ff   : > { %p2291_p7 = por %p2290_p10, %p2289_p11 }
 0x400   : > { %p2287_p3 = pneg %p2286_p2 }
 0x401   : > { %p2293_p8 = por %p2292_p0, %p2291_p7 }
 0x403   : > { %p2294_p12 = pnand %p2293_p8, %p2287_p3 }
 0x405   : > { %2297 = shalt.err (!%p2294_p12)
}
 0x406   : > { %s2442_s15 = smov 128   ;;  %s2443_s27 = smov 8  }
 0x407   : > { %1963 = dma.vmem_to_hbm [thread:$0]  (%p3271_p13), %s3105_s0, 2048, %s3102_s24, %s3109_s25, %s2442_s15, %s2442_s15, %s2443_s27  }
 0x408 PF: > { %s3272_s11 = sld [smem:[#allocation17_spill]]  ;;  %s3273_s4 = sld [smem:[#allocation24_spill]] }
 0x409   : > { %p1988_p5 = scmp.ge.s32.totalorder %s2428_s18, 2 }
 0x40e   : > { %s1467_s22 = sand.u32 1, %s3272_s11   ;;  %p3274_p4 = scmp.ne.s32.totalorder %s3273_s4, 0 }
 0x40f   : > { %s1468_s14 = scalar_lea.sflag [#allocation5], %s1467_s22 }
 0x410   : > { %p1980_p9 = pnand %p1988_p5, %p3274_p4 }
 0x412   : > { %2371 = dma.done.wait (!%p1980_p9), %s1468_s14, 2048  }
 0x413   : > { %2373 = vsyncadd (!%p1980_p9), %s1468_s14, 4294965248  ;;  %s28_s18 = sadd.s32 1, %s2428_s18   ;;  %s3276_s27 = sld [smem:[#allocation18_spill]] }
 0x414   : > { %p3138_p6 = scmp.ge.s32.totalorder %s28_s18, 6   ;;  %s3277_s24 = sld [smem:[#allocation25_spill]] }
 0x415   : > { %s3278_s28 = smov %s2384_s29  ;;  %s3279_s29 = smov %s2688_s3 }
 0x416   : > { %s3280_s30 = smov %s2392_s9  ;;  %s3281_s9 = smov %s2396_s10 }
 0x417   : > { %s3282_s10 = smov %s2745_s6  ;;  %s3283_s11 = smov %s2404_s12 }
 0x418   : > { %s3284_s12 = smov %s2408_s13  ;;  %s3285_s13 = smov %s2691_s7 }
 0x419   : > { %s3286_s14 = smov %s2420_s16  ;;  %s3287_s15 = smov %s2424_s17 }
 0x41a   : > { %s3288_s16 = smov %s3277_s24  ;;  %s3289_s17 = smov %s3295_s20 }
 0x41b   :  { %27 = sbr.rel (!%p3138_p6) target bundleno = 22 (0x16), region = 132 }
 0x422   :  { %1473 = vsyncpa [#allocation4], 1 }
 0x423   :  { %1475 = vsyncpa [#allocation4 + $0x1], 1 }
 0x424   :  { %1476 = vsyncpa [#allocation7], 1 }
 0x425   :  { %1478 = vsyncpa [#allocation7 + $0x1], 1 }
 0x426   :  { %1479 = vsyncpa [#allocation10], 1 }
 0x427   :  { %1480 = vsyncpa [#allocation5], 1 }
 0x428   :  { %1482 = vsyncpa [#allocation5 + $0x1], 1 }

</bundles_post_ra>
